<compile_context>
chip_gen: v7x
topology: tpu7x:2x2x1
jax: 0.10.0
libtpu: 0.0.40
codegen_flags: <defaults>
</compile_context>

<pallas_src>
import functools

import jax
import jax.numpy as jnp
from jax.experimental import pallas as pl
from jax.experimental.pallas import tpu as pltpu


def gru_classifier_kernel(x_ref,      # (S, Ip)   time-major input, last batch row, cols padded to Ip
                          w_ref,      # (Ip+3H, 6H) packed weight slab (see wrapper layout)
                          b_ref,      # (8, 3H)   packed bias slab
                          out_ref,    # (S, O)
                          *, input_rows, hidden_size, output_size, seq):
    Ip, H, O, S = input_rows, hidden_size, output_size, seq
    H2, H3, H6 = 2 * H, 3 * H, 6 * H

    # ---- static slab slices (one-time VMEM reads; row offsets are 8-aligned) ----
    wih0 = w_ref[0:Ip, 0:H3]                       # (Ip, 3H)
    w1bd = w_ref[Ip:Ip + H, 0:H6]                  # (H, 6H) = [wih1^T | whh0^T]
    whh1 = w_ref[Ip + H:Ip + H2, 0:H3]             # (H, 3H)
    wfc  = w_ref[Ip + H2:Ip + H3, 0:O]             # (H, O)

    bgi0 = b_ref[0:1, 0:H3]                        # bih0 + [bhh0_r, bhh0_z, 0]
    bgi1 = b_ref[1:2, 0:H3]                        # bih1 + [bhh1_r, bhh1_z, 0]
    bn0  = b_ref[2:3, 0:H]                         # bhh0_n
    bn1  = b_ref[3:4, 0:H]                         # bhh1_n
    bfc  = b_ref[4:5, 0:O]

    # ---- hoisted layer-0 input-to-hidden projection: one MXU call for all steps ----
    gi0_all = jnp.dot(x_ref[...], wih0,
                      preferred_element_type=jnp.float32) + bgi0      # (S, 3H)

    h1 = jnp.zeros((1, H), jnp.float32)            # PyTorch default h0 = 0
    h2 = jnp.zeros((1, H), jnp.float32)
    gh0 = jnp.zeros((1, H3), jnp.float32)          # h1_{t-1} @ whh0^T (zero at t=0)
    gh1 = jnp.zeros((1, H3), jnp.float32)          # h2_{t-1} @ whh1^T (zero at t=0)
    rows = []

    # Static (fully unrolled) time loop: S is a small compile-time constant, giving the
    # scheduler cross-iteration visibility to overlap MXU pushes with EUP sigmoid/tanh.
    for t in range(S):
        gi0 = gi0_all[t:t + 1, :]                  # static 2-D row slice (no reshape)

        # layer 0 (PyTorch gate order r, z, n)
        r0 = jax.nn.sigmoid(gi0[:, 0:H] + gh0[:, 0:H])
        z0 = jax.nn.sigmoid(gi0[:, H:H2] + gh0[:, H:H2])
        n0 = jnp.tanh(gi0[:, H2:H3] + r0 * (gh0[:, H2:H3] + bn0))
        h1 = (1.0 - z0) * n0 + z0 * h1

        # Fused push depending only on h1_t: layer-1 input projection for step t AND
        # layer-0 recurrent projection for step t+1 (one MXU round-trip per step on
        # the serial chain instead of two; no lane concat).
        fused = jnp.dot(h1, w1bd, preferred_element_type=jnp.float32)  # (1, 6H)
        gi1 = fused[:, 0:H3] + bgi1
        gh0 = fused[:, H3:H6]

        # layer 1
        r1 = jax.nn.sigmoid(gi1[:, 0:H] + gh1[:, 0:H])
        z1 = jax.nn.sigmoid(gi1[:, H:H2] + gh1[:, H:H2])
        n1 = jnp.tanh(gi1[:, H2:H3] + r1 * (gh1[:, H2:H3] + bn1))
        h2 = (1.0 - z1) * n1 + z1 * h2

        # Issue layer-1's recurrent projection for t+1 immediately after h2_t; its
        # fill/drain hides under the next step's layer-0 transcendentals.
        if t + 1 < S:
            gh1 = jnp.dot(h2, whh1, preferred_element_type=jnp.float32)

        rows.append(h2)                            # gru_out[t, -1, :]

    # ---- hoisted FC head: one (S, H) x (H, O) matmul + a single store ----
    sel = jnp.concatenate(rows, axis=0)            # (S, H)
    out_ref[...] = jnp.dot(sel, wfc,
                           preferred_element_type=jnp.float32) + bfc


def gru_motion_classifier(x, params, hidden_size):
    H = hidden_size
    O = params["w_fc"].shape[0]
    f32 = jnp.float32

    # Only batch row B-1 reaches the output (see header note) -> run recurrence at B=1.
    if x.ndim == 3:
        x_last = x[:, -1, :]
    else:                                          # unbatched (S, I) branch of forward()
        x_last = x
    S, I = x_last.shape

    Ip = -(-I // 8) * 8                            # pad input dim to a sublane multiple
    x_pad = jnp.zeros((S, Ip), f32).at[:, :I].set(x_last.astype(f32))

    # Fold bhh_{r,z} into the input-projection bias; keep bhh_n separate (it sits
    # inside the r * (.) term of the GRU cell in PyTorch's formulation).
    def fold_bias(bih, bhh):
        return bih + jnp.concatenate([bhh[:2 * H], jnp.zeros((H,), f32)])

    # --- packed weight slab: rows [0,Ip)=wih0^T, [Ip,Ip+H)=[wih1^T|whh0^T],
    #     [Ip+H,Ip+2H)=whh1^T, [Ip+2H,Ip+3H)=wfc^T; lane width 6H ---
    w_slab = jnp.zeros((Ip + 3 * H, 6 * H), f32)
    w_slab = w_slab.at[:I, :3 * H].set(params["w_ih_l0"].T)
    w_slab = w_slab.at[Ip:Ip + H, :3 * H].set(params["w_ih_l1"].T)
    w_slab = w_slab.at[Ip:Ip + H, 3 * H:].set(params["w_hh_l0"].T)
    w_slab = w_slab.at[Ip + H:Ip + 2 * H, :3 * H].set(params["w_hh_l1"].T)
    w_slab = w_slab.at[Ip + 2 * H:Ip + 3 * H, :O].set(params["w_fc"].T)

    # --- packed bias slab (8 rows x 3H lanes) ---
    b_slab = jnp.zeros((8, 3 * H), f32)
    b_slab = b_slab.at[0, :].set(fold_bias(params["b_ih_l0"], params["b_hh_l0"]))
    b_slab = b_slab.at[1, :].set(fold_bias(params["b_ih_l1"], params["b_hh_l1"]))
    b_slab = b_slab.at[2, :H].set(params["b_hh_l0"][2 * H:])
    b_slab = b_slab.at[3, :H].set(params["b_hh_l1"][2 * H:])
    b_slab = b_slab.at[4, :O].set(params["b_fc"])

    kernel = functools.partial(gru_classifier_kernel,
                               input_rows=Ip, hidden_size=H, output_size=O, seq=S)
    vmem = pl.BlockSpec(memory_space=pltpu.MemorySpace.VMEM)

    # Everything (<100 KiB) is whole-array VMEM resident -> single invocation, no grid.
    return pl.pallas_call(
        kernel,
        out_shape=jax.ShapeDtypeStruct((S, O), f32),
        in_specs=[vmem, vmem, vmem],
        out_specs=vmem,
    )(x_pad, w_slab, b_slab)


def init_params(key, input_size, hidden_size, output_size):
    """Deterministic init matching PyTorch shapes: uniform(-1/sqrt(H), 1/sqrt(H))."""
    k = 1.0 / jnp.sqrt(jnp.float32(hidden_size))
    names_shapes = [
        ("w_ih_l0", (3 * hidden_size, input_size)),
        ("w_hh_l0", (3 * hidden_size, hidden_size)),
        ("b_ih_l0", (3 * hidden_size,)),
        ("b_hh_l0", (3 * hidden_size,)),
        ("w_ih_l1", (3 * hidden_size, hidden_size)),
        ("w_hh_l1", (3 * hidden_size, hidden_size)),
        ("b_ih_l1", (3 * hidden_size,)),
        ("b_hh_l1", (3 * hidden_size,)),
        ("w_fc", (output_size, hidden_size)),
        ("b_fc", (output_size,)),
    ]
    keys = jax.random.split(key, len(names_shapes))
    return {name: jax.random.uniform(kk, shape, jnp.float32, -k, k)
            for kk, (name, shape) in zip(keys, names_shapes)}


def reference_forward(x, params, hidden_size):
    """Pure-JAX reference replicating PyTorch nn.GRU + fc(gru_out[:, -1, :])."""
    H = hidden_size
    S, B, _ = x.shape

    def cell(x_t, h_prev, wih, whh, bih, bhh):
        gi = x_t @ wih.T + bih
        gh = h_prev @ whh.T + bhh
        r = jax.nn.sigmoid(gi[:, :H] + gh[:, :H])
        z = jax.nn.sigmoid(gi[:, H:2 * H] + gh[:, H:2 * H])
        n = jnp.tanh(gi[:, 2 * H:] + r * gh[:, 2 * H:])
        return (1.0 - z) * n + z * h_prev

    h1 = jnp.zeros((B, H), jnp.float32)
    h2 = jnp.zeros((B, H), jnp.float32)
    outs = []
    for t in range(S):
        h1 = cell(x[t], h1, params["w_ih_l0"], params["w_hh_l0"],
                  params["b_ih_l0"], params["b_hh_l0"])
        h2 = cell(h1, h2, params["w_ih_l1"], params["w_hh_l1"],
                  params["b_ih_l1"], params["b_hh_l1"])
        outs.append(h2)
    gru_out = jnp.stack(outs, axis=0)                 # (S, B, H)
    sel = gru_out[:, -1, :]                           # (S, H) == PyTorch gru_out[:, -1, :]
    return sel @ params["w_fc"].T + params["b_fc"]    # (S, O)


if __name__ == "__main__":
    SEQ, BATCH, INPUT, HIDDEN, OUTPUT = 8, 2, 16, 32, 8

    key = jax.random.PRNGKey(0)
    k_x, k_p = jax.random.split(key)
    x = jax.random.normal(k_x, (SEQ, BATCH, INPUT), jnp.float32)  # (S, B, I), batch_first=False
    params = init_params(k_p, INPUT, HIDDEN, OUTPUT)

    out = gru_motion_classifier(x, params, HIDDEN)
    out = jax.block_until_ready(out)

    ref = reference_forward(x, params, HIDDEN)
    assert out.shape == (SEQ, OUTPUT)
    assert jnp.allclose(out, ref, atol=1e-4, rtol=1e-4), float(jnp.max(jnp.abs(out - ref)))

    print("KERNEL_OK")
</pallas_src>

<mosaic_0001>
module attributes {stable_mosaic.version = 11 : i64} {
  func.func @gru_classifier_kernel(%arg0: memref<8x16xf32, #tpu.memory_space<vmem>>, %arg1: memref<112x192xf32, #tpu.memory_space<vmem>>, %arg2: memref<8x96xf32, #tpu.memory_space<vmem>>, %arg3: memref<8x8xf32, #tpu.memory_space<vmem>>) attributes {dimension_semantics = [], scalar_prefetch = 0 : i64, scratch_operands = 0 : i64, tpu.core_type = #tpu.core_type<tc>} {
    %c0 = arith.constant 0 : index
    %c0_0 = arith.constant 0 : index
    %0 = vector.load %arg1[%c0, %c0_0] : memref<112x192xf32, #tpu.memory_space<vmem>>, vector<16x96xf32>
    %c16 = arith.constant 16 : index
    %c0_1 = arith.constant 0 : index
    %1 = vector.load %arg1[%c16, %c0_1] : memref<112x192xf32, #tpu.memory_space<vmem>>, vector<32x192xf32>
    %c48 = arith.constant 48 : index
    %c0_2 = arith.constant 0 : index
    %2 = vector.load %arg1[%c48, %c0_2] : memref<112x192xf32, #tpu.memory_space<vmem>>, vector<32x96xf32>
    %c80 = arith.constant 80 : index
    %c0_3 = arith.constant 0 : index
    %3 = vector.load %arg1[%c80, %c0_3] : memref<112x192xf32, #tpu.memory_space<vmem>>, vector<32x8xf32>
    %c0_4 = arith.constant 0 : index
    %c0_5 = arith.constant 0 : index
    %4 = vector.load %arg2[%c0_4, %c0_5] : memref<8x96xf32, #tpu.memory_space<vmem>>, vector<1x96xf32>
    %c1 = arith.constant 1 : index
    %c0_6 = arith.constant 0 : index
    %5 = vector.load %arg2[%c1, %c0_6] : memref<8x96xf32, #tpu.memory_space<vmem>>, vector<1x96xf32>
    %c2 = arith.constant 2 : index
    %c0_7 = arith.constant 0 : index
    %6 = vector.load %arg2[%c2, %c0_7] : memref<8x96xf32, #tpu.memory_space<vmem>>, vector<1x32xf32>
    %c3 = arith.constant 3 : index
    %c0_8 = arith.constant 0 : index
    %7 = vector.load %arg2[%c3, %c0_8] : memref<8x96xf32, #tpu.memory_space<vmem>>, vector<1x32xf32>
    %c4 = arith.constant 4 : index
    %c0_9 = arith.constant 0 : index
    %8 = vector.load %arg2[%c4, %c0_9] : memref<8x96xf32, #tpu.memory_space<vmem>>, vector<1x8xf32>
    %c0_10 = arith.constant 0 : index
    %c0_11 = arith.constant 0 : index
    %9 = vector.load %arg0[%c0_10, %c0_11] : memref<8x16xf32, #tpu.memory_space<vmem>>, vector<8x16xf32>
    %cst = arith.constant dense<0.000000e+00> : vector<8x96xf32>
    %10 = tpu.matmul %9, %0, %cst {dimension_numbers = #tpu.dot_dimension_numbers<[1], [0], [0], [1], [0, 0, 1, 1], [], []>} : vector<8x16xf32>, vector<16x96xf32>, vector<8x96xf32> -> vector<8x96xf32>
    %11 = vector.broadcast %4 : vector<1x96xf32> to vector<8x96xf32>
    %12 = arith.addf %10, %11 : vector<8x96xf32>
    %cst_12 = arith.constant 0.000000e+00 : f32
    %13 = vector.broadcast %cst_12 : f32 to vector<1x32xf32>
    %cst_13 = arith.constant 0.000000e+00 : f32
    %14 = vector.broadcast %cst_13 : f32 to vector<1x32xf32>
    %cst_14 = arith.constant 0.000000e+00 : f32
    %15 = vector.broadcast %cst_14 : f32 to vector<1x96xf32>
    %cst_15 = arith.constant 0.000000e+00 : f32
    %16 = vector.broadcast %cst_15 : f32 to vector<1x96xf32>
    %17 = vector.extract_strided_slice %12 {offsets = [0, 0], sizes = [1, 96], strides = [1, 1]} : vector<8x96xf32> to vector<1x96xf32>
    %18 = vector.extract_strided_slice %17 {offsets = [0, 0], sizes = [1, 32], strides = [1, 1]} : vector<1x96xf32> to vector<1x32xf32>
    %19 = vector.extract_strided_slice %15 {offsets = [0, 0], sizes = [1, 32], strides = [1, 1]} : vector<1x96xf32> to vector<1x32xf32>
    %20 = arith.addf %18, %19 : vector<1x32xf32>
    %21 = arith.negf %20 : vector<1x32xf32>
    %22 = math.exp %21 : vector<1x32xf32>
    %cst_16 = arith.constant 1.000000e+00 : f32
    %23 = vector.broadcast %cst_16 : f32 to vector<1x32xf32>
    %24 = arith.addf %23, %22 : vector<1x32xf32>
    %25 = arith.divf %23, %24 : vector<1x32xf32>
    %26 = vector.extract_strided_slice %17 {offsets = [0, 32], sizes = [1, 32], strides = [1, 1]} : vector<1x96xf32> to vector<1x32xf32>
    %27 = vector.extract_strided_slice %15 {offsets = [0, 32], sizes = [1, 32], strides = [1, 1]} : vector<1x96xf32> to vector<1x32xf32>
    %28 = arith.addf %26, %27 : vector<1x32xf32>
    %29 = arith.negf %28 : vector<1x32xf32>
    %30 = math.exp %29 : vector<1x32xf32>
    %cst_17 = arith.constant 1.000000e+00 : f32
    %31 = vector.broadcast %cst_17 : f32 to vector<1x32xf32>
    %32 = arith.addf %31, %30 : vector<1x32xf32>
    %33 = arith.divf %31, %32 : vector<1x32xf32>
    %34 = vector.extract_strided_slice %17 {offsets = [0, 64], sizes = [1, 32], strides = [1, 1]} : vector<1x96xf32> to vector<1x32xf32>
    %35 = vector.extract_strided_slice %15 {offsets = [0, 64], sizes = [1, 32], strides = [1, 1]} : vector<1x96xf32> to vector<1x32xf32>
    %36 = arith.addf %35, %6 : vector<1x32xf32>
    %37 = arith.mulf %25, %36 : vector<1x32xf32>
    %38 = arith.addf %34, %37 : vector<1x32xf32>
    %39 = math.tanh %38 : vector<1x32xf32>
    %cst_18 = arith.constant 1.000000e+00 : f32
    %40 = vector.broadcast %cst_18 : f32 to vector<1x32xf32>
    %41 = arith.subf %40, %33 : vector<1x32xf32>
    %42 = arith.mulf %41, %39 : vector<1x32xf32>
    %43 = arith.mulf %33, %13 : vector<1x32xf32>
    %44 = arith.addf %42, %43 : vector<1x32xf32>
    %cst_19 = arith.constant dense<0.000000e+00> : vector<1x192xf32>
    %45 = tpu.matmul %44, %1, %cst_19 {dimension_numbers = #tpu.dot_dimension_numbers<[1], [0], [0], [1], [0, 0, 1, 1], [], []>} : vector<1x32xf32>, vector<32x192xf32>, vector<1x192xf32> -> vector<1x192xf32>
    %46 = vector.extract_strided_slice %45 {offsets = [0, 0], sizes = [1, 96], strides = [1, 1]} : vector<1x192xf32> to vector<1x96xf32>
    %47 = arith.addf %46, %5 : vector<1x96xf32>
    %48 = vector.extract_strided_slice %45 {offsets = [0, 96], sizes = [1, 96], strides = [1, 1]} : vector<1x192xf32> to vector<1x96xf32>
    %49 = vector.extract_strided_slice %47 {offsets = [0, 0], sizes = [1, 32], strides = [1, 1]} : vector<1x96xf32> to vector<1x32xf32>
    %50 = vector.extract_strided_slice %16 {offsets = [0, 0], sizes = [1, 32], strides = [1, 1]} : vector<1x96xf32> to vector<1x32xf32>
    %51 = arith.addf %49, %50 : vector<1x32xf32>
    %52 = arith.negf %51 : vector<1x32xf32>
    %53 = math.exp %52 : vector<1x32xf32>
    %cst_20 = arith.constant 1.000000e+00 : f32
    %54 = vector.broadcast %cst_20 : f32 to vector<1x32xf32>
    %55 = arith.addf %54, %53 : vector<1x32xf32>
    %56 = arith.divf %54, %55 : vector<1x32xf32>
    %57 = vector.extract_strided_slice %47 {offsets = [0, 32], sizes = [1, 32], strides = [1, 1]} : vector<1x96xf32> to vector<1x32xf32>
    %58 = vector.extract_strided_slice %16 {offsets = [0, 32], sizes = [1, 32], strides = [1, 1]} : vector<1x96xf32> to vector<1x32xf32>
    %59 = arith.addf %57, %58 : vector<1x32xf32>
    %60 = arith.negf %59 : vector<1x32xf32>
    %61 = math.exp %60 : vector<1x32xf32>
    %cst_21 = arith.constant 1.000000e+00 : f32
    %62 = vector.broadcast %cst_21 : f32 to vector<1x32xf32>
    %63 = arith.addf %62, %61 : vector<1x32xf32>
    %64 = arith.divf %62, %63 : vector<1x32xf32>
    %65 = vector.extract_strided_slice %47 {offsets = [0, 64], sizes = [1, 32], strides = [1, 1]} : vector<1x96xf32> to vector<1x32xf32>
    %66 = vector.extract_strided_slice %16 {offsets = [0, 64], sizes = [1, 32], strides = [1, 1]} : vector<1x96xf32> to vector<1x32xf32>
    %67 = arith.addf %66, %7 : vector<1x32xf32>
    %68 = arith.mulf %56, %67 : vector<1x32xf32>
    %69 = arith.addf %65, %68 : vector<1x32xf32>
    %70 = math.tanh %69 : vector<1x32xf32>
    %cst_22 = arith.constant 1.000000e+00 : f32
    %71 = vector.broadcast %cst_22 : f32 to vector<1x32xf32>
    %72 = arith.subf %71, %64 : vector<1x32xf32>
    %73 = arith.mulf %72, %70 : vector<1x32xf32>
    %74 = arith.mulf %64, %14 : vector<1x32xf32>
    %75 = arith.addf %73, %74 : vector<1x32xf32>
    %cst_23 = arith.constant dense<0.000000e+00> : vector<1x96xf32>
    %76 = tpu.matmul %75, %2, %cst_23 {dimension_numbers = #tpu.dot_dimension_numbers<[1], [0], [0], [1], [0, 0, 1, 1], [], []>} : vector<1x32xf32>, vector<32x96xf32>, vector<1x96xf32> -> vector<1x96xf32>
    %77 = vector.extract_strided_slice %12 {offsets = [1, 0], sizes = [1, 96], strides = [1, 1]} : vector<8x96xf32> to vector<1x96xf32>
    %78 = vector.extract_strided_slice %77 {offsets = [0, 0], sizes = [1, 32], strides = [1, 1]} : vector<1x96xf32> to vector<1x32xf32>
    %79 = vector.extract_strided_slice %48 {offsets = [0, 0], sizes = [1, 32], strides = [1, 1]} : vector<1x96xf32> to vector<1x32xf32>
    %80 = arith.addf %78, %79 : vector<1x32xf32>
    %81 = arith.negf %80 : vector<1x32xf32>
    %82 = math.exp %81 : vector<1x32xf32>
    %cst_24 = arith.constant 1.000000e+00 : f32
    %83 = vector.broadcast %cst_24 : f32 to vector<1x32xf32>
    %84 = arith.addf %83, %82 : vector<1x32xf32>
    %85 = arith.divf %83, %84 : vector<1x32xf32>
    %86 = vector.extract_strided_slice %77 {offsets = [0, 32], sizes = [1, 32], strides = [1, 1]} : vector<1x96xf32> to vector<1x32xf32>
    %87 = vector.extract_strided_slice %48 {offsets = [0, 32], sizes = [1, 32], strides = [1, 1]} : vector<1x96xf32> to vector<1x32xf32>
    %88 = arith.addf %86, %87 : vector<1x32xf32>
    %89 = arith.negf %88 : vector<1x32xf32>
    %90 = math.exp %89 : vector<1x32xf32>
    %cst_25 = arith.constant 1.000000e+00 : f32
    %91 = vector.broadcast %cst_25 : f32 to vector<1x32xf32>
    %92 = arith.addf %91, %90 : vector<1x32xf32>
    %93 = arith.divf %91, %92 : vector<1x32xf32>
    %94 = vector.extract_strided_slice %77 {offsets = [0, 64], sizes = [1, 32], strides = [1, 1]} : vector<1x96xf32> to vector<1x32xf32>
    %95 = vector.extract_strided_slice %48 {offsets = [0, 64], sizes = [1, 32], strides = [1, 1]} : vector<1x96xf32> to vector<1x32xf32>
    %96 = arith.addf %95, %6 : vector<1x32xf32>
    %97 = arith.mulf %85, %96 : vector<1x32xf32>
    %98 = arith.addf %94, %97 : vector<1x32xf32>
    %99 = math.tanh %98 : vector<1x32xf32>
    %cst_26 = arith.constant 1.000000e+00 : f32
    %100 = vector.broadcast %cst_26 : f32 to vector<1x32xf32>
    %101 = arith.subf %100, %93 : vector<1x32xf32>
    %102 = arith.mulf %101, %99 : vector<1x32xf32>
    %103 = arith.mulf %93, %44 : vector<1x32xf32>
    %104 = arith.addf %102, %103 : vector<1x32xf32>
    %cst_27 = arith.constant dense<0.000000e+00> : vector<1x192xf32>
    %105 = tpu.matmul %104, %1, %cst_27 {dimension_numbers = #tpu.dot_dimension_numbers<[1], [0], [0], [1], [0, 0, 1, 1], [], []>} : vector<1x32xf32>, vector<32x192xf32>, vector<1x192xf32> -> vector<1x192xf32>
    %106 = vector.extract_strided_slice %105 {offsets = [0, 0], sizes = [1, 96], strides = [1, 1]} : vector<1x192xf32> to vector<1x96xf32>
    %107 = arith.addf %106, %5 : vector<1x96xf32>
    %108 = vector.extract_strided_slice %105 {offsets = [0, 96], sizes = [1, 96], strides = [1, 1]} : vector<1x192xf32> to vector<1x96xf32>
    %109 = vector.extract_strided_slice %107 {offsets = [0, 0], sizes = [1, 32], strides = [1, 1]} : vector<1x96xf32> to vector<1x32xf32>
    %110 = vector.extract_strided_slice %76 {offsets = [0, 0], sizes = [1, 32], strides = [1, 1]} : vector<1x96xf32> to vector<1x32xf32>
    %111 = arith.addf %109, %110 : vector<1x32xf32>
    %112 = arith.negf %111 : vector<1x32xf32>
    %113 = math.exp %112 : vector<1x32xf32>
    %cst_28 = arith.constant 1.000000e+00 : f32
    %114 = vector.broadcast %cst_28 : f32 to vector<1x32xf32>
    %115 = arith.addf %114, %113 : vector<1x32xf32>
    %116 = arith.divf %114, %115 : vector<1x32xf32>
    %117 = vector.extract_strided_slice %107 {offsets = [0, 32], sizes = [1, 32], strides = [1, 1]} : vector<1x96xf32> to vector<1x32xf32>
    %118 = vector.extract_strided_slice %76 {offsets = [0, 32], sizes = [1, 32], strides = [1, 1]} : vector<1x96xf32> to vector<1x32xf32>
    %119 = arith.addf %117, %118 : vector<1x32xf32>
    %120 = arith.negf %119 : vector<1x32xf32>
    %121 = math.exp %120 : vector<1x32xf32>
    %cst_29 = arith.constant 1.000000e+00 : f32
    %122 = vector.broadcast %cst_29 : f32 to vector<1x32xf32>
    %123 = arith.addf %122, %121 : vector<1x32xf32>
    %124 = arith.divf %122, %123 : vector<1x32xf32>
    %125 = vector.extract_strided_slice %107 {offsets = [0, 64], sizes = [1, 32], strides = [1, 1]} : vector<1x96xf32> to vector<1x32xf32>
    %126 = vector.extract_strided_slice %76 {offsets = [0, 64], sizes = [1, 32], strides = [1, 1]} : vector<1x96xf32> to vector<1x32xf32>
    %127 = arith.addf %126, %7 : vector<1x32xf32>
    %128 = arith.mulf %116, %127 : vector<1x32xf32>
    %129 = arith.addf %125, %128 : vector<1x32xf32>
    %130 = math.tanh %129 : vector<1x32xf32>
    %cst_30 = arith.constant 1.000000e+00 : f32
    %131 = vector.broadcast %cst_30 : f32 to vector<1x32xf32>
    %132 = arith.subf %131, %124 : vector<1x32xf32>
    %133 = arith.mulf %132, %130 : vector<1x32xf32>
    %134 = arith.mulf %124, %75 : vector<1x32xf32>
    %135 = arith.addf %133, %134 : vector<1x32xf32>
    %cst_31 = arith.constant dense<0.000000e+00> : vector<1x96xf32>
    %136 = tpu.matmul %135, %2, %cst_31 {dimension_numbers = #tpu.dot_dimension_numbers<[1], [0], [0], [1], [0, 0, 1, 1], [], []>} : vector<1x32xf32>, vector<32x96xf32>, vector<1x96xf32> -> vector<1x96xf32>
    %137 = vector.extract_strided_slice %12 {offsets = [2, 0], sizes = [1, 96], strides = [1, 1]} : vector<8x96xf32> to vector<1x96xf32>
    %138 = vector.extract_strided_slice %137 {offsets = [0, 0], sizes = [1, 32], strides = [1, 1]} : vector<1x96xf32> to vector<1x32xf32>
    %139 = vector.extract_strided_slice %108 {offsets = [0, 0], sizes = [1, 32], strides = [1, 1]} : vector<1x96xf32> to vector<1x32xf32>
    %140 = arith.addf %138, %139 : vector<1x32xf32>
    %141 = arith.negf %140 : vector<1x32xf32>
    %142 = math.exp %141 : vector<1x32xf32>
    %cst_32 = arith.constant 1.000000e+00 : f32
    %143 = vector.broadcast %cst_32 : f32 to vector<1x32xf32>
    %144 = arith.addf %143, %142 : vector<1x32xf32>
    %145 = arith.divf %143, %144 : vector<1x32xf32>
    %146 = vector.extract_strided_slice %137 {offsets = [0, 32], sizes = [1, 32], strides = [1, 1]} : vector<1x96xf32> to vector<1x32xf32>
    %147 = vector.extract_strided_slice %108 {offsets = [0, 32], sizes = [1, 32], strides = [1, 1]} : vector<1x96xf32> to vector<1x32xf32>
    %148 = arith.addf %146, %147 : vector<1x32xf32>
    %149 = arith.negf %148 : vector<1x32xf32>
    %150 = math.exp %149 : vector<1x32xf32>
    %cst_33 = arith.constant 1.000000e+00 : f32
    %151 = vector.broadcast %cst_33 : f32 to vector<1x32xf32>
    %152 = arith.addf %151, %150 : vector<1x32xf32>
    %153 = arith.divf %151, %152 : vector<1x32xf32>
    %154 = vector.extract_strided_slice %137 {offsets = [0, 64], sizes = [1, 32], strides = [1, 1]} : vector<1x96xf32> to vector<1x32xf32>
    %155 = vector.extract_strided_slice %108 {offsets = [0, 64], sizes = [1, 32], strides = [1, 1]} : vector<1x96xf32> to vector<1x32xf32>
    %156 = arith.addf %155, %6 : vector<1x32xf32>
    %157 = arith.mulf %145, %156 : vector<1x32xf32>
    %158 = arith.addf %154, %157 : vector<1x32xf32>
    %159 = math.tanh %158 : vector<1x32xf32>
    %cst_34 = arith.constant 1.000000e+00 : f32
    %160 = vector.broadcast %cst_34 : f32 to vector<1x32xf32>
    %161 = arith.subf %160, %153 : vector<1x32xf32>
    %162 = arith.mulf %161, %159 : vector<1x32xf32>
    %163 = arith.mulf %153, %104 : vector<1x32xf32>
    %164 = arith.addf %162, %163 : vector<1x32xf32>
    %cst_35 = arith.constant dense<0.000000e+00> : vector<1x192xf32>
    %165 = tpu.matmul %164, %1, %cst_35 {dimension_numbers = #tpu.dot_dimension_numbers<[1], [0], [0], [1], [0, 0, 1, 1], [], []>} : vector<1x32xf32>, vector<32x192xf32>, vector<1x192xf32> -> vector<1x192xf32>
    %166 = vector.extract_strided_slice %165 {offsets = [0, 0], sizes = [1, 96], strides = [1, 1]} : vector<1x192xf32> to vector<1x96xf32>
    %167 = arith.addf %166, %5 : vector<1x96xf32>
    %168 = vector.extract_strided_slice %165 {offsets = [0, 96], sizes = [1, 96], strides = [1, 1]} : vector<1x192xf32> to vector<1x96xf32>
    %169 = vector.extract_strided_slice %167 {offsets = [0, 0], sizes = [1, 32], strides = [1, 1]} : vector<1x96xf32> to vector<1x32xf32>
    %170 = vector.extract_strided_slice %136 {offsets = [0, 0], sizes = [1, 32], strides = [1, 1]} : vector<1x96xf32> to vector<1x32xf32>
    %171 = arith.addf %169, %170 : vector<1x32xf32>
    %172 = arith.negf %171 : vector<1x32xf32>
    %173 = math.exp %172 : vector<1x32xf32>
    %cst_36 = arith.constant 1.000000e+00 : f32
    %174 = vector.broadcast %cst_36 : f32 to vector<1x32xf32>
    %175 = arith.addf %174, %173 : vector<1x32xf32>
    %176 = arith.divf %174, %175 : vector<1x32xf32>
    %177 = vector.extract_strided_slice %167 {offsets = [0, 32], sizes = [1, 32], strides = [1, 1]} : vector<1x96xf32> to vector<1x32xf32>
    %178 = vector.extract_strided_slice %136 {offsets = [0, 32], sizes = [1, 32], strides = [1, 1]} : vector<1x96xf32> to vector<1x32xf32>
    %179 = arith.addf %177, %178 : vector<1x32xf32>
    %180 = arith.negf %179 : vector<1x32xf32>
    %181 = math.exp %180 : vector<1x32xf32>
    %cst_37 = arith.constant 1.000000e+00 : f32
    %182 = vector.broadcast %cst_37 : f32 to vector<1x32xf32>
    %183 = arith.addf %182, %181 : vector<1x32xf32>
    %184 = arith.divf %182, %183 : vector<1x32xf32>
    %185 = vector.extract_strided_slice %167 {offsets = [0, 64], sizes = [1, 32], strides = [1, 1]} : vector<1x96xf32> to vector<1x32xf32>
    %186 = vector.extract_strided_slice %136 {offsets = [0, 64], sizes = [1, 32], strides = [1, 1]} : vector<1x96xf32> to vector<1x32xf32>
    %187 = arith.addf %186, %7 : vector<1x32xf32>
    %188 = arith.mulf %176, %187 : vector<1x32xf32>
    %189 = arith.addf %185, %188 : vector<1x32xf32>
    %190 = math.tanh %189 : vector<1x32xf32>
    %cst_38 = arith.constant 1.000000e+00 : f32
    %191 = vector.broadcast %cst_38 : f32 to vector<1x32xf32>
    %192 = arith.subf %191, %184 : vector<1x32xf32>
    %193 = arith.mulf %192, %190 : vector<1x32xf32>
    %194 = arith.mulf %184, %135 : vector<1x32xf32>
    %195 = arith.addf %193, %194 : vector<1x32xf32>
    %cst_39 = arith.constant dense<0.000000e+00> : vector<1x96xf32>
    %196 = tpu.matmul %195, %2, %cst_39 {dimension_numbers = #tpu.dot_dimension_numbers<[1], [0], [0], [1], [0, 0, 1, 1], [], []>} : vector<1x32xf32>, vector<32x96xf32>, vector<1x96xf32> -> vector<1x96xf32>
    %197 = vector.extract_strided_slice %12 {offsets = [3, 0], sizes = [1, 96], strides = [1, 1]} : vector<8x96xf32> to vector<1x96xf32>
    %198 = vector.extract_strided_slice %197 {offsets = [0, 0], sizes = [1, 32], strides = [1, 1]} : vector<1x96xf32> to vector<1x32xf32>
    %199 = vector.extract_strided_slice %168 {offsets = [0, 0], sizes = [1, 32], strides = [1, 1]} : vector<1x96xf32> to vector<1x32xf32>
    %200 = arith.addf %198, %199 : vector<1x32xf32>
    %201 = arith.negf %200 : vector<1x32xf32>
    %202 = math.exp %201 : vector<1x32xf32>
    %cst_40 = arith.constant 1.000000e+00 : f32
    %203 = vector.broadcast %cst_40 : f32 to vector<1x32xf32>
    %204 = arith.addf %203, %202 : vector<1x32xf32>
    %205 = arith.divf %203, %204 : vector<1x32xf32>
    %206 = vector.extract_strided_slice %197 {offsets = [0, 32], sizes = [1, 32], strides = [1, 1]} : vector<1x96xf32> to vector<1x32xf32>
    %207 = vector.extract_strided_slice %168 {offsets = [0, 32], sizes = [1, 32], strides = [1, 1]} : vector<1x96xf32> to vector<1x32xf32>
    %208 = arith.addf %206, %207 : vector<1x32xf32>
    %209 = arith.negf %208 : vector<1x32xf32>
    %210 = math.exp %209 : vector<1x32xf32>
    %cst_41 = arith.constant 1.000000e+00 : f32
    %211 = vector.broadcast %cst_41 : f32 to vector<1x32xf32>
    %212 = arith.addf %211, %210 : vector<1x32xf32>
    %213 = arith.divf %211, %212 : vector<1x32xf32>
    %214 = vector.extract_strided_slice %197 {offsets = [0, 64], sizes = [1, 32], strides = [1, 1]} : vector<1x96xf32> to vector<1x32xf32>
    %215 = vector.extract_strided_slice %168 {offsets = [0, 64], sizes = [1, 32], strides = [1, 1]} : vector<1x96xf32> to vector<1x32xf32>
    %216 = arith.addf %215, %6 : vector<1x32xf32>
    %217 = arith.mulf %205, %216 : vector<1x32xf32>
    %218 = arith.addf %214, %217 : vector<1x32xf32>
    %219 = math.tanh %218 : vector<1x32xf32>
    %cst_42 = arith.constant 1.000000e+00 : f32
    %220 = vector.broadcast %cst_42 : f32 to vector<1x32xf32>
    %221 = arith.subf %220, %213 : vector<1x32xf32>
    %222 = arith.mulf %221, %219 : vector<1x32xf32>
    %223 = arith.mulf %213, %164 : vector<1x32xf32>
    %224 = arith.addf %222, %223 : vector<1x32xf32>
    %cst_43 = arith.constant dense<0.000000e+00> : vector<1x192xf32>
    %225 = tpu.matmul %224, %1, %cst_43 {dimension_numbers = #tpu.dot_dimension_numbers<[1], [0], [0], [1], [0, 0, 1, 1], [], []>} : vector<1x32xf32>, vector<32x192xf32>, vector<1x192xf32> -> vector<1x192xf32>
    %226 = vector.extract_strided_slice %225 {offsets = [0, 0], sizes = [1, 96], strides = [1, 1]} : vector<1x192xf32> to vector<1x96xf32>
    %227 = arith.addf %226, %5 : vector<1x96xf32>
    %228 = vector.extract_strided_slice %225 {offsets = [0, 96], sizes = [1, 96], strides = [1, 1]} : vector<1x192xf32> to vector<1x96xf32>
    %229 = vector.extract_strided_slice %227 {offsets = [0, 0], sizes = [1, 32], strides = [1, 1]} : vector<1x96xf32> to vector<1x32xf32>
    %230 = vector.extract_strided_slice %196 {offsets = [0, 0], sizes = [1, 32], strides = [1, 1]} : vector<1x96xf32> to vector<1x32xf32>
    %231 = arith.addf %229, %230 : vector<1x32xf32>
    %232 = arith.negf %231 : vector<1x32xf32>
    %233 = math.exp %232 : vector<1x32xf32>
    %cst_44 = arith.constant 1.000000e+00 : f32
    %234 = vector.broadcast %cst_44 : f32 to vector<1x32xf32>
    %235 = arith.addf %234, %233 : vector<1x32xf32>
    %236 = arith.divf %234, %235 : vector<1x32xf32>
    %237 = vector.extract_strided_slice %227 {offsets = [0, 32], sizes = [1, 32], strides = [1, 1]} : vector<1x96xf32> to vector<1x32xf32>
    %238 = vector.extract_strided_slice %196 {offsets = [0, 32], sizes = [1, 32], strides = [1, 1]} : vector<1x96xf32> to vector<1x32xf32>
    %239 = arith.addf %237, %238 : vector<1x32xf32>
    %240 = arith.negf %239 : vector<1x32xf32>
    %241 = math.exp %240 : vector<1x32xf32>
    %cst_45 = arith.constant 1.000000e+00 : f32
    %242 = vector.broadcast %cst_45 : f32 to vector<1x32xf32>
    %243 = arith.addf %242, %241 : vector<1x32xf32>
    %244 = arith.divf %242, %243 : vector<1x32xf32>
    %245 = vector.extract_strided_slice %227 {offsets = [0, 64], sizes = [1, 32], strides = [1, 1]} : vector<1x96xf32> to vector<1x32xf32>
    %246 = vector.extract_strided_slice %196 {offsets = [0, 64], sizes = [1, 32], strides = [1, 1]} : vector<1x96xf32> to vector<1x32xf32>
    %247 = arith.addf %246, %7 : vector<1x32xf32>
    %248 = arith.mulf %236, %247 : vector<1x32xf32>
    %249 = arith.addf %245, %248 : vector<1x32xf32>
    %250 = math.tanh %249 : vector<1x32xf32>
    %cst_46 = arith.constant 1.000000e+00 : f32
    %251 = vector.broadcast %cst_46 : f32 to vector<1x32xf32>
    %252 = arith.subf %251, %244 : vector<1x32xf32>
    %253 = arith.mulf %252, %250 : vector<1x32xf32>
    %254 = arith.mulf %244, %195 : vector<1x32xf32>
    %255 = arith.addf %253, %254 : vector<1x32xf32>
    %cst_47 = arith.constant dense<0.000000e+00> : vector<1x96xf32>
    %256 = tpu.matmul %255, %2, %cst_47 {dimension_numbers = #tpu.dot_dimension_numbers<[1], [0], [0], [1], [0, 0, 1, 1], [], []>} : vector<1x32xf32>, vector<32x96xf32>, vector<1x96xf32> -> vector<1x96xf32>
    %257 = vector.extract_strided_slice %12 {offsets = [4, 0], sizes = [1, 96], strides = [1, 1]} : vector<8x96xf32> to vector<1x96xf32>
    %258 = vector.extract_strided_slice %257 {offsets = [0, 0], sizes = [1, 32], strides = [1, 1]} : vector<1x96xf32> to vector<1x32xf32>
    %259 = vector.extract_strided_slice %228 {offsets = [0, 0], sizes = [1, 32], strides = [1, 1]} : vector<1x96xf32> to vector<1x32xf32>
    %260 = arith.addf %258, %259 : vector<1x32xf32>
    %261 = arith.negf %260 : vector<1x32xf32>
    %262 = math.exp %261 : vector<1x32xf32>
    %cst_48 = arith.constant 1.000000e+00 : f32
    %263 = vector.broadcast %cst_48 : f32 to vector<1x32xf32>
    %264 = arith.addf %263, %262 : vector<1x32xf32>
    %265 = arith.divf %263, %264 : vector<1x32xf32>
    %266 = vector.extract_strided_slice %257 {offsets = [0, 32], sizes = [1, 32], strides = [1, 1]} : vector<1x96xf32> to vector<1x32xf32>
    %267 = vector.extract_strided_slice %228 {offsets = [0, 32], sizes = [1, 32], strides = [1, 1]} : vector<1x96xf32> to vector<1x32xf32>
    %268 = arith.addf %266, %267 : vector<1x32xf32>
    %269 = arith.negf %268 : vector<1x32xf32>
    %270 = math.exp %269 : vector<1x32xf32>
    %cst_49 = arith.constant 1.000000e+00 : f32
    %271 = vector.broadcast %cst_49 : f32 to vector<1x32xf32>
    %272 = arith.addf %271, %270 : vector<1x32xf32>
    %273 = arith.divf %271, %272 : vector<1x32xf32>
    %274 = vector.extract_strided_slice %257 {offsets = [0, 64], sizes = [1, 32], strides = [1, 1]} : vector<1x96xf32> to vector<1x32xf32>
    %275 = vector.extract_strided_slice %228 {offsets = [0, 64], sizes = [1, 32], strides = [1, 1]} : vector<1x96xf32> to vector<1x32xf32>
    %276 = arith.addf %275, %6 : vector<1x32xf32>
    %277 = arith.mulf %265, %276 : vector<1x32xf32>
    %278 = arith.addf %274, %277 : vector<1x32xf32>
    %279 = math.tanh %278 : vector<1x32xf32>
    %cst_50 = arith.constant 1.000000e+00 : f32
    %280 = vector.broadcast %cst_50 : f32 to vector<1x32xf32>
    %281 = arith.subf %280, %273 : vector<1x32xf32>
    %282 = arith.mulf %281, %279 : vector<1x32xf32>
    %283 = arith.mulf %273, %224 : vector<1x32xf32>
    %284 = arith.addf %282, %283 : vector<1x32xf32>
    %cst_51 = arith.constant dense<0.000000e+00> : vector<1x192xf32>
    %285 = tpu.matmul %284, %1, %cst_51 {dimension_numbers = #tpu.dot_dimension_numbers<[1], [0], [0], [1], [0, 0, 1, 1], [], []>} : vector<1x32xf32>, vector<32x192xf32>, vector<1x192xf32> -> vector<1x192xf32>
    %286 = vector.extract_strided_slice %285 {offsets = [0, 0], sizes = [1, 96], strides = [1, 1]} : vector<1x192xf32> to vector<1x96xf32>
    %287 = arith.addf %286, %5 : vector<1x96xf32>
    %288 = vector.extract_strided_slice %285 {offsets = [0, 96], sizes = [1, 96], strides = [1, 1]} : vector<1x192xf32> to vector<1x96xf32>
    %289 = vector.extract_strided_slice %287 {offsets = [0, 0], sizes = [1, 32], strides = [1, 1]} : vector<1x96xf32> to vector<1x32xf32>
    %290 = vector.extract_strided_slice %256 {offsets = [0, 0], sizes = [1, 32], strides = [1, 1]} : vector<1x96xf32> to vector<1x32xf32>
    %291 = arith.addf %289, %290 : vector<1x32xf32>
    %292 = arith.negf %291 : vector<1x32xf32>
    %293 = math.exp %292 : vector<1x32xf32>
    %cst_52 = arith.constant 1.000000e+00 : f32
    %294 = vector.broadcast %cst_52 : f32 to vector<1x32xf32>
    %295 = arith.addf %294, %293 : vector<1x32xf32>
    %296 = arith.divf %294, %295 : vector<1x32xf32>
    %297 = vector.extract_strided_slice %287 {offsets = [0, 32], sizes = [1, 32], strides = [1, 1]} : vector<1x96xf32> to vector<1x32xf32>
    %298 = vector.extract_strided_slice %256 {offsets = [0, 32], sizes = [1, 32], strides = [1, 1]} : vector<1x96xf32> to vector<1x32xf32>
    %299 = arith.addf %297, %298 : vector<1x32xf32>
    %300 = arith.negf %299 : vector<1x32xf32>
    %301 = math.exp %300 : vector<1x32xf32>
    %cst_53 = arith.constant 1.000000e+00 : f32
    %302 = vector.broadcast %cst_53 : f32 to vector<1x32xf32>
    %303 = arith.addf %302, %301 : vector<1x32xf32>
    %304 = arith.divf %302, %303 : vector<1x32xf32>
    %305 = vector.extract_strided_slice %287 {offsets = [0, 64], sizes = [1, 32], strides = [1, 1]} : vector<1x96xf32> to vector<1x32xf32>
    %306 = vector.extract_strided_slice %256 {offsets = [0, 64], sizes = [1, 32], strides = [1, 1]} : vector<1x96xf32> to vector<1x32xf32>
    %307 = arith.addf %306, %7 : vector<1x32xf32>
    %308 = arith.mulf %296, %307 : vector<1x32xf32>
    %309 = arith.addf %305, %308 : vector<1x32xf32>
    %310 = math.tanh %309 : vector<1x32xf32>
    %cst_54 = arith.constant 1.000000e+00 : f32
    %311 = vector.broadcast %cst_54 : f32 to vector<1x32xf32>
    %312 = arith.subf %311, %304 : vector<1x32xf32>
    %313 = arith.mulf %312, %310 : vector<1x32xf32>
    %314 = arith.mulf %304, %255 : vector<1x32xf32>
    %315 = arith.addf %313, %314 : vector<1x32xf32>
    %cst_55 = arith.constant dense<0.000000e+00> : vector<1x96xf32>
    %316 = tpu.matmul %315, %2, %cst_55 {dimension_numbers = #tpu.dot_dimension_numbers<[1], [0], [0], [1], [0, 0, 1, 1], [], []>} : vector<1x32xf32>, vector<32x96xf32>, vector<1x96xf32> -> vector<1x96xf32>
    %317 = vector.extract_strided_slice %12 {offsets = [5, 0], sizes = [1, 96], strides = [1, 1]} : vector<8x96xf32> to vector<1x96xf32>
    %318 = vector.extract_strided_slice %317 {offsets = [0, 0], sizes = [1, 32], strides = [1, 1]} : vector<1x96xf32> to vector<1x32xf32>
    %319 = vector.extract_strided_slice %288 {offsets = [0, 0], sizes = [1, 32], strides = [1, 1]} : vector<1x96xf32> to vector<1x32xf32>
    %320 = arith.addf %318, %319 : vector<1x32xf32>
    %321 = arith.negf %320 : vector<1x32xf32>
    %322 = math.exp %321 : vector<1x32xf32>
    %cst_56 = arith.constant 1.000000e+00 : f32
    %323 = vector.broadcast %cst_56 : f32 to vector<1x32xf32>
    %324 = arith.addf %323, %322 : vector<1x32xf32>
    %325 = arith.divf %323, %324 : vector<1x32xf32>
    %326 = vector.extract_strided_slice %317 {offsets = [0, 32], sizes = [1, 32], strides = [1, 1]} : vector<1x96xf32> to vector<1x32xf32>
    %327 = vector.extract_strided_slice %288 {offsets = [0, 32], sizes = [1, 32], strides = [1, 1]} : vector<1x96xf32> to vector<1x32xf32>
    %328 = arith.addf %326, %327 : vector<1x32xf32>
    %329 = arith.negf %328 : vector<1x32xf32>
    %330 = math.exp %329 : vector<1x32xf32>
    %cst_57 = arith.constant 1.000000e+00 : f32
    %331 = vector.broadcast %cst_57 : f32 to vector<1x32xf32>
    %332 = arith.addf %331, %330 : vector<1x32xf32>
    %333 = arith.divf %331, %332 : vector<1x32xf32>
    %334 = vector.extract_strided_slice %317 {offsets = [0, 64], sizes = [1, 32], strides = [1, 1]} : vector<1x96xf32> to vector<1x32xf32>
    %335 = vector.extract_strided_slice %288 {offsets = [0, 64], sizes = [1, 32], strides = [1, 1]} : vector<1x96xf32> to vector<1x32xf32>
    %336 = arith.addf %335, %6 : vector<1x32xf32>
    %337 = arith.mulf %325, %336 : vector<1x32xf32>
    %338 = arith.addf %334, %337 : vector<1x32xf32>
    %339 = math.tanh %338 : vector<1x32xf32>
    %cst_58 = arith.constant 1.000000e+00 : f32
    %340 = vector.broadcast %cst_58 : f32 to vector<1x32xf32>
    %341 = arith.subf %340, %333 : vector<1x32xf32>
    %342 = arith.mulf %341, %339 : vector<1x32xf32>
    %343 = arith.mulf %333, %284 : vector<1x32xf32>
    %344 = arith.addf %342, %343 : vector<1x32xf32>
    %cst_59 = arith.constant dense<0.000000e+00> : vector<1x192xf32>
    %345 = tpu.matmul %344, %1, %cst_59 {dimension_numbers = #tpu.dot_dimension_numbers<[1], [0], [0], [1], [0, 0, 1, 1], [], []>} : vector<1x32xf32>, vector<32x192xf32>, vector<1x192xf32> -> vector<1x192xf32>
    %346 = vector.extract_strided_slice %345 {offsets = [0, 0], sizes = [1, 96], strides = [1, 1]} : vector<1x192xf32> to vector<1x96xf32>
    %347 = arith.addf %346, %5 : vector<1x96xf32>
    %348 = vector.extract_strided_slice %345 {offsets = [0, 96], sizes = [1, 96], strides = [1, 1]} : vector<1x192xf32> to vector<1x96xf32>
    %349 = vector.extract_strided_slice %347 {offsets = [0, 0], sizes = [1, 32], strides = [1, 1]} : vector<1x96xf32> to vector<1x32xf32>
    %350 = vector.extract_strided_slice %316 {offsets = [0, 0], sizes = [1, 32], strides = [1, 1]} : vector<1x96xf32> to vector<1x32xf32>
    %351 = arith.addf %349, %350 : vector<1x32xf32>
    %352 = arith.negf %351 : vector<1x32xf32>
    %353 = math.exp %352 : vector<1x32xf32>
    %cst_60 = arith.constant 1.000000e+00 : f32
    %354 = vector.broadcast %cst_60 : f32 to vector<1x32xf32>
    %355 = arith.addf %354, %353 : vector<1x32xf32>
    %356 = arith.divf %354, %355 : vector<1x32xf32>
    %357 = vector.extract_strided_slice %347 {offsets = [0, 32], sizes = [1, 32], strides = [1, 1]} : vector<1x96xf32> to vector<1x32xf32>
    %358 = vector.extract_strided_slice %316 {offsets = [0, 32], sizes = [1, 32], strides = [1, 1]} : vector<1x96xf32> to vector<1x32xf32>
    %359 = arith.addf %357, %358 : vector<1x32xf32>
    %360 = arith.negf %359 : vector<1x32xf32>
    %361 = math.exp %360 : vector<1x32xf32>
    %cst_61 = arith.constant 1.000000e+00 : f32
    %362 = vector.broadcast %cst_61 : f32 to vector<1x32xf32>
    %363 = arith.addf %362, %361 : vector<1x32xf32>
    %364 = arith.divf %362, %363 : vector<1x32xf32>
    %365 = vector.extract_strided_slice %347 {offsets = [0, 64], sizes = [1, 32], strides = [1, 1]} : vector<1x96xf32> to vector<1x32xf32>
    %366 = vector.extract_strided_slice %316 {offsets = [0, 64], sizes = [1, 32], strides = [1, 1]} : vector<1x96xf32> to vector<1x32xf32>
    %367 = arith.addf %366, %7 : vector<1x32xf32>
    %368 = arith.mulf %356, %367 : vector<1x32xf32>
    %369 = arith.addf %365, %368 : vector<1x32xf32>
    %370 = math.tanh %369 : vector<1x32xf32>
    %cst_62 = arith.constant 1.000000e+00 : f32
    %371 = vector.broadcast %cst_62 : f32 to vector<1x32xf32>
    %372 = arith.subf %371, %364 : vector<1x32xf32>
    %373 = arith.mulf %372, %370 : vector<1x32xf32>
    %374 = arith.mulf %364, %315 : vector<1x32xf32>
    %375 = arith.addf %373, %374 : vector<1x32xf32>
    %cst_63 = arith.constant dense<0.000000e+00> : vector<1x96xf32>
    %376 = tpu.matmul %375, %2, %cst_63 {dimension_numbers = #tpu.dot_dimension_numbers<[1], [0], [0], [1], [0, 0, 1, 1], [], []>} : vector<1x32xf32>, vector<32x96xf32>, vector<1x96xf32> -> vector<1x96xf32>
    %377 = vector.extract_strided_slice %12 {offsets = [6, 0], sizes = [1, 96], strides = [1, 1]} : vector<8x96xf32> to vector<1x96xf32>
    %378 = vector.extract_strided_slice %377 {offsets = [0, 0], sizes = [1, 32], strides = [1, 1]} : vector<1x96xf32> to vector<1x32xf32>
    %379 = vector.extract_strided_slice %348 {offsets = [0, 0], sizes = [1, 32], strides = [1, 1]} : vector<1x96xf32> to vector<1x32xf32>
    %380 = arith.addf %378, %379 : vector<1x32xf32>
    %381 = arith.negf %380 : vector<1x32xf32>
    %382 = math.exp %381 : vector<1x32xf32>
    %cst_64 = arith.constant 1.000000e+00 : f32
    %383 = vector.broadcast %cst_64 : f32 to vector<1x32xf32>
    %384 = arith.addf %383, %382 : vector<1x32xf32>
    %385 = arith.divf %383, %384 : vector<1x32xf32>
    %386 = vector.extract_strided_slice %377 {offsets = [0, 32], sizes = [1, 32], strides = [1, 1]} : vector<1x96xf32> to vector<1x32xf32>
    %387 = vector.extract_strided_slice %348 {offsets = [0, 32], sizes = [1, 32], strides = [1, 1]} : vector<1x96xf32> to vector<1x32xf32>
    %388 = arith.addf %386, %387 : vector<1x32xf32>
    %389 = arith.negf %388 : vector<1x32xf32>
    %390 = math.exp %389 : vector<1x32xf32>
    %cst_65 = arith.constant 1.000000e+00 : f32
    %391 = vector.broadcast %cst_65 : f32 to vector<1x32xf32>
    %392 = arith.addf %391, %390 : vector<1x32xf32>
    %393 = arith.divf %391, %392 : vector<1x32xf32>
    %394 = vector.extract_strided_slice %377 {offsets = [0, 64], sizes = [1, 32], strides = [1, 1]} : vector<1x96xf32> to vector<1x32xf32>
    %395 = vector.extract_strided_slice %348 {offsets = [0, 64], sizes = [1, 32], strides = [1, 1]} : vector<1x96xf32> to vector<1x32xf32>
    %396 = arith.addf %395, %6 : vector<1x32xf32>
    %397 = arith.mulf %385, %396 : vector<1x32xf32>
    %398 = arith.addf %394, %397 : vector<1x32xf32>
    %399 = math.tanh %398 : vector<1x32xf32>
    %cst_66 = arith.constant 1.000000e+00 : f32
    %400 = vector.broadcast %cst_66 : f32 to vector<1x32xf32>
    %401 = arith.subf %400, %393 : vector<1x32xf32>
    %402 = arith.mulf %401, %399 : vector<1x32xf32>
    %403 = arith.mulf %393, %344 : vector<1x32xf32>
    %404 = arith.addf %402, %403 : vector<1x32xf32>
    %cst_67 = arith.constant dense<0.000000e+00> : vector<1x192xf32>
    %405 = tpu.matmul %404, %1, %cst_67 {dimension_numbers = #tpu.dot_dimension_numbers<[1], [0], [0], [1], [0, 0, 1, 1], [], []>} : vector<1x32xf32>, vector<32x192xf32>, vector<1x192xf32> -> vector<1x192xf32>
    %406 = vector.extract_strided_slice %405 {offsets = [0, 0], sizes = [1, 96], strides = [1, 1]} : vector<1x192xf32> to vector<1x96xf32>
    %407 = arith.addf %406, %5 : vector<1x96xf32>
    %408 = vector.extract_strided_slice %405 {offsets = [0, 96], sizes = [1, 96], strides = [1, 1]} : vector<1x192xf32> to vector<1x96xf32>
    %409 = vector.extract_strided_slice %407 {offsets = [0, 0], sizes = [1, 32], strides = [1, 1]} : vector<1x96xf32> to vector<1x32xf32>
    %410 = vector.extract_strided_slice %376 {offsets = [0, 0], sizes = [1, 32], strides = [1, 1]} : vector<1x96xf32> to vector<1x32xf32>
    %411 = arith.addf %409, %410 : vector<1x32xf32>
    %412 = arith.negf %411 : vector<1x32xf32>
    %413 = math.exp %412 : vector<1x32xf32>
    %cst_68 = arith.constant 1.000000e+00 : f32
    %414 = vector.broadcast %cst_68 : f32 to vector<1x32xf32>
    %415 = arith.addf %414, %413 : vector<1x32xf32>
    %416 = arith.divf %414, %415 : vector<1x32xf32>
    %417 = vector.extract_strided_slice %407 {offsets = [0, 32], sizes = [1, 32], strides = [1, 1]} : vector<1x96xf32> to vector<1x32xf32>
    %418 = vector.extract_strided_slice %376 {offsets = [0, 32], sizes = [1, 32], strides = [1, 1]} : vector<1x96xf32> to vector<1x32xf32>
    %419 = arith.addf %417, %418 : vector<1x32xf32>
    %420 = arith.negf %419 : vector<1x32xf32>
    %421 = math.exp %420 : vector<1x32xf32>
    %cst_69 = arith.constant 1.000000e+00 : f32
    %422 = vector.broadcast %cst_69 : f32 to vector<1x32xf32>
    %423 = arith.addf %422, %421 : vector<1x32xf32>
    %424 = arith.divf %422, %423 : vector<1x32xf32>
    %425 = vector.extract_strided_slice %407 {offsets = [0, 64], sizes = [1, 32], strides = [1, 1]} : vector<1x96xf32> to vector<1x32xf32>
    %426 = vector.extract_strided_slice %376 {offsets = [0, 64], sizes = [1, 32], strides = [1, 1]} : vector<1x96xf32> to vector<1x32xf32>
    %427 = arith.addf %426, %7 : vector<1x32xf32>
    %428 = arith.mulf %416, %427 : vector<1x32xf32>
    %429 = arith.addf %425, %428 : vector<1x32xf32>
    %430 = math.tanh %429 : vector<1x32xf32>
    %cst_70 = arith.constant 1.000000e+00 : f32
    %431 = vector.broadcast %cst_70 : f32 to vector<1x32xf32>
    %432 = arith.subf %431, %424 : vector<1x32xf32>
    %433 = arith.mulf %432, %430 : vector<1x32xf32>
    %434 = arith.mulf %424, %375 : vector<1x32xf32>
    %435 = arith.addf %433, %434 : vector<1x32xf32>
    %cst_71 = arith.constant dense<0.000000e+00> : vector<1x96xf32>
    %436 = tpu.matmul %435, %2, %cst_71 {dimension_numbers = #tpu.dot_dimension_numbers<[1], [0], [0], [1], [0, 0, 1, 1], [], []>} : vector<1x32xf32>, vector<32x96xf32>, vector<1x96xf32> -> vector<1x96xf32>
    %437 = vector.extract_strided_slice %12 {offsets = [7, 0], sizes = [1, 96], strides = [1, 1]} : vector<8x96xf32> to vector<1x96xf32>
    %438 = vector.extract_strided_slice %437 {offsets = [0, 0], sizes = [1, 32], strides = [1, 1]} : vector<1x96xf32> to vector<1x32xf32>
    %439 = vector.extract_strided_slice %408 {offsets = [0, 0], sizes = [1, 32], strides = [1, 1]} : vector<1x96xf32> to vector<1x32xf32>
    %440 = arith.addf %438, %439 : vector<1x32xf32>
    %441 = arith.negf %440 : vector<1x32xf32>
    %442 = math.exp %441 : vector<1x32xf32>
    %cst_72 = arith.constant 1.000000e+00 : f32
    %443 = vector.broadcast %cst_72 : f32 to vector<1x32xf32>
    %444 = arith.addf %443, %442 : vector<1x32xf32>
    %445 = arith.divf %443, %444 : vector<1x32xf32>
    %446 = vector.extract_strided_slice %437 {offsets = [0, 32], sizes = [1, 32], strides = [1, 1]} : vector<1x96xf32> to vector<1x32xf32>
    %447 = vector.extract_strided_slice %408 {offsets = [0, 32], sizes = [1, 32], strides = [1, 1]} : vector<1x96xf32> to vector<1x32xf32>
    %448 = arith.addf %446, %447 : vector<1x32xf32>
    %449 = arith.negf %448 : vector<1x32xf32>
    %450 = math.exp %449 : vector<1x32xf32>
    %cst_73 = arith.constant 1.000000e+00 : f32
    %451 = vector.broadcast %cst_73 : f32 to vector<1x32xf32>
    %452 = arith.addf %451, %450 : vector<1x32xf32>
    %453 = arith.divf %451, %452 : vector<1x32xf32>
    %454 = vector.extract_strided_slice %437 {offsets = [0, 64], sizes = [1, 32], strides = [1, 1]} : vector<1x96xf32> to vector<1x32xf32>
    %455 = vector.extract_strided_slice %408 {offsets = [0, 64], sizes = [1, 32], strides = [1, 1]} : vector<1x96xf32> to vector<1x32xf32>
    %456 = arith.addf %455, %6 : vector<1x32xf32>
    %457 = arith.mulf %445, %456 : vector<1x32xf32>
    %458 = arith.addf %454, %457 : vector<1x32xf32>
    %459 = math.tanh %458 : vector<1x32xf32>
    %cst_74 = arith.constant 1.000000e+00 : f32
    %460 = vector.broadcast %cst_74 : f32 to vector<1x32xf32>
    %461 = arith.subf %460, %453 : vector<1x32xf32>
    %462 = arith.mulf %461, %459 : vector<1x32xf32>
    %463 = arith.mulf %453, %404 : vector<1x32xf32>
    %464 = arith.addf %462, %463 : vector<1x32xf32>
    %cst_75 = arith.constant dense<0.000000e+00> : vector<1x192xf32>
    %465 = tpu.matmul %464, %1, %cst_75 {dimension_numbers = #tpu.dot_dimension_numbers<[1], [0], [0], [1], [0, 0, 1, 1], [], []>} : vector<1x32xf32>, vector<32x192xf32>, vector<1x192xf32> -> vector<1x192xf32>
    %466 = vector.extract_strided_slice %465 {offsets = [0, 0], sizes = [1, 96], strides = [1, 1]} : vector<1x192xf32> to vector<1x96xf32>
    %467 = arith.addf %466, %5 : vector<1x96xf32>
    %468 = vector.extract_strided_slice %467 {offsets = [0, 0], sizes = [1, 32], strides = [1, 1]} : vector<1x96xf32> to vector<1x32xf32>
    %469 = vector.extract_strided_slice %436 {offsets = [0, 0], sizes = [1, 32], strides = [1, 1]} : vector<1x96xf32> to vector<1x32xf32>
    %470 = arith.addf %468, %469 : vector<1x32xf32>
    %471 = arith.negf %470 : vector<1x32xf32>
    %472 = math.exp %471 : vector<1x32xf32>
    %cst_76 = arith.constant 1.000000e+00 : f32
    %473 = vector.broadcast %cst_76 : f32 to vector<1x32xf32>
    %474 = arith.addf %473, %472 : vector<1x32xf32>
    %475 = arith.divf %473, %474 : vector<1x32xf32>
    %476 = vector.extract_strided_slice %467 {offsets = [0, 32], sizes = [1, 32], strides = [1, 1]} : vector<1x96xf32> to vector<1x32xf32>
    %477 = vector.extract_strided_slice %436 {offsets = [0, 32], sizes = [1, 32], strides = [1, 1]} : vector<1x96xf32> to vector<1x32xf32>
    %478 = arith.addf %476, %477 : vector<1x32xf32>
    %479 = arith.negf %478 : vector<1x32xf32>
    %480 = math.exp %479 : vector<1x32xf32>
    %cst_77 = arith.constant 1.000000e+00 : f32
    %481 = vector.broadcast %cst_77 : f32 to vector<1x32xf32>
    %482 = arith.addf %481, %480 : vector<1x32xf32>
    %483 = arith.divf %481, %482 : vector<1x32xf32>
    %484 = vector.extract_strided_slice %467 {offsets = [0, 64], sizes = [1, 32], strides = [1, 1]} : vector<1x96xf32> to vector<1x32xf32>
    %485 = vector.extract_strided_slice %436 {offsets = [0, 64], sizes = [1, 32], strides = [1, 1]} : vector<1x96xf32> to vector<1x32xf32>
    %486 = arith.addf %485, %7 : vector<1x32xf32>
    %487 = arith.mulf %475, %486 : vector<1x32xf32>
    %488 = arith.addf %484, %487 : vector<1x32xf32>
    %489 = math.tanh %488 : vector<1x32xf32>
    %cst_78 = arith.constant 1.000000e+00 : f32
    %490 = vector.broadcast %cst_78 : f32 to vector<1x32xf32>
    %491 = arith.subf %490, %483 : vector<1x32xf32>
    %492 = arith.mulf %491, %489 : vector<1x32xf32>
    %493 = arith.mulf %483, %435 : vector<1x32xf32>
    %494 = arith.addf %492, %493 : vector<1x32xf32>
    %495 = tpu.concatenate %75, %135, %195, %255, %315, %375, %435, %494 in 0 : vector<1x32xf32>, vector<1x32xf32>, vector<1x32xf32>, vector<1x32xf32>, vector<1x32xf32>, vector<1x32xf32>, vector<1x32xf32>, vector<1x32xf32> -> vector<8x32xf32>
    %cst_79 = arith.constant dense<0.000000e+00> : vector<8x8xf32>
    %496 = tpu.matmul %495, %3, %cst_79 {dimension_numbers = #tpu.dot_dimension_numbers<[1], [0], [0], [1], [0, 0, 1, 1], [], []>} : vector<8x32xf32>, vector<32x8xf32>, vector<8x8xf32> -> vector<8x8xf32>
    %497 = vector.broadcast %8 : vector<1x8xf32> to vector<8x8xf32>
    %498 = arith.addf %496, %497 : vector<8x8xf32>
    %c0_80 = arith.constant 0 : index
    %c0_81 = arith.constant 0 : index
    %499 = vector.load %arg3[%c0_80, %c0_81] : memref<8x8xf32, #tpu.memory_space<vmem>>, vector<8x8xf32>
    tpu.vector_store %arg3[%c0_80, %c0_81], %498 {strides = array<i32>} : memref<8x8xf32, #tpu.memory_space<vmem>>, vector<8x8xf32>,
    return
  }
}

</mosaic_0001>

<bundles_post_ra>
// kernel: tpu_custom_call.1
= control target key start
LH: loop header
LB: loop body
LE: loop exit
PB: predicated region body
PF: predicated region fallthrough
CT: control target
= control target key end

     0   :  { %v2412_v2 = vmov 0.0|0.0   ;;  %vm2413_vm0 = vmmov 0   ;;  %v2414_v4 = vmov 0.0   ;;  %s2832_s0 = inlined_call_operand.vmem [shape: f32[8,16], index: 0, kind: input, shape index: {}]   ;;  %s2833_s1 = inlined_call_operand.vmem [shape: f32[112,192], index: 1, kind: input, shape index: {}]   ;;  %s2834_s2 = inlined_call_operand.vmem [shape: f32[8,96], index: 2, kind: input, shape index: {}]   ;;  %s2835_s3 = inlined_call_operand.hbm [shape: f32[8,8], index: 3, kind: output, shape index: {}]  }
   0x1   :  { %v15_v0 = vld [vmem:[%s2833_s1] sm:$0xff]  ;;  %v16_v1 = vld [vmem:[%s2833_s1 + $0x10] sm:$0xff]  ;;  %2141 = vmatprep.subr.bf16.mxu0 %v2412_v2  ;;  %2050 = vmatprep.mubr.msk.f32.mxu0 %vm2413_vm0, %v2414_v4 }
   0x2   :  { %v2142_v3 = vpack.c.bf16 %v16_v1, %v15_v0 }
   0x3   :  { %8 = vsyncpa [#allocation3], 0  ;;  %210 = vmatprep.mubr.f32.mxu1 %v2414_v4  ;;  %v38_v5 = vld [vmem:[%s2832_s0] sm:$0xff]  ;;  %vm43_vm1 = vcmask 130048   ;;  %s2415_s21 = smov 64   ;;  %v18_v18 = vld [vmem:[%s2833_s1 + $0x28] sm:$0xff] }
   0x4   :  { %2143 = vmatpush3.bf16.msra.mxu0 %v2142_v3  ;;  %v1961_v6 = vld [vmem:[%s2834_s2] ss:$0 sm:$0xff]  ;;  %v35_v13 = vld [vmem:[%s2834_s2 + $0x2] sm:$0x1]  ;;  %v20_v19 = vld [vmem:[%s2833_s1 + $0x38] sm:$0xff]  ;;  %s2416_s11 = smov 96  }
   0x5   :  { %2152 = vmatprep.subr.bf16.mxu0 %v2412_v2  ;;  %v17_v20 = vld [vmem:[%s2833_s1 + $0x20] sm:$0xff]  ;;  %v2475_v21 = vpack.c.bf16 %v20_v19, %v18_v18  ;;  %v19_v22 = vld [vmem:[%s2833_s1 + $0x30] sm:$0xff]  ;;  %v22_v23 = vld [vmem:[%s2833_s1 + $0x48] sm:$0xff]  ;;  %s2417_s12 = smov 32   ;;  %vm143_vm2 = vcmask 261120   ;;  %vm1852_vm3 = vcmask 1040384  }
   0x6   :  { %v24_v24 = vld [vmem:[%s2833_s1 + $0x58] sm:$0xff]  ;;  %v2486_v25 = vpack.c.bf16 %v19_v22, %v17_v20  ;;  %v21_v27 = vld [vmem:[%s2833_s1 + $0x40] sm:$0xff]  ;;  %v23_v28 = vld [vmem:[%s2833_s1 + $0x50] sm:$0xff]  ;;  %vm1854_vm4 = vcmask 1041408   ;;  %vm1856_vm5 = vcmask 1042432   ;;  %vm1858_vm6 = vcmask 1043456  }
   0x7   :  { %2051 = vmatmul.mubr.msk.f32.vlgmr.msra.gmra.mrb[0].mxu0 %vm43_vm1, %v38_v5  ;;  %v2488_v26 = vpack.c.bf16 %v24_v24, %v22_v23  ;;  %2145 = vmatprep.subr.bf16.mxu1 %v2475_v21  ;;  %v2498_v29 = vpack.c.bf16 %v23_v28, %v21_v27  ;;  %v2523_v52 = vld [vmem:[%s2834_s2 + $0x1] sm:$0x1]  ;;  %v36_v61 = vld [vmem:[%s2834_s2 + $0x3] sm:$0x1]  ;;  %v26_v18 = vld [vmem:[%s2833_s1 + $0x70] sm:$0xff]  ;;  %vm1860_vm7 = vcmask 1044480  }
   0x8   :  { %2061 = vmatprep.mubr.msk.f32.mxu0 %vm2413_vm0, %v2414_v4  ;;  %2147 = vmatpush1.bf16.msra.mxu1 %v2486_v25  ;;  %v27_v19 = vld [vmem:[%s2833_s1 + $0x80] sm:$0xff]  ;;  %v28_v22 = vld [vmem:[%s2833_s1 + $0x90] sm:$0xff]  ;;  %vm1862_vm8 = vcmask 1045504   ;;  %vm1864_vm9 = vcmask 1046528   ;;  %s2418_s8 = smov [#allocation2]   ;;  %vm1945_vm10 = vcmask 64512  }
   0x9   :  { %2149 = vmatprep.subr.bf16.mxu1 %v2488_v26  ;;  %v2552_v23 = vpack.c.bf16 %v28_v22, %v27_v19  ;;  %s1953_s9 = sshll.u32 %s2418_s8, 4  ;;  %s1954_s9 = int_to_ptr.vmem [resolvable:$true] %s1953_s9 }
   0xa   :  { %s2388_s10 = scalar_lea.vmem %s1954_s9, 128  ;;  %p2393_p1 = scmp.lt.s32.totalorder %s1954_s9, %s1954_s9 }
   0xb   :  { %p2389_p0 = scmp.ne.s32.totalorder %s1954_s9, %s2388_s10  ;;  %p2394_p2 = scmp.lt.s32.totalorder %s2388_s10, %s2388_s10 }
   0xc   :  { %2151 = vmatpush1.bf16.msra.mxu1 %v2498_v29 }
   0xd   :  { %2159 = vmatprep.subr.bf16.mxu1 %v2475_v21  ;;  %p2395_p3 = por %p2394_p2, %p2393_p1 }
   0xf   :  { %p2396_p4 = pnand %p2395_p3, %p2389_p0 }
  0xda   :  { %v113_v7 = vpop.f32.mrb[0].mxu0 }
  0xdb   :  { %v2458_v8 = vadd.f32 %v1961_v6, %v113_v7  ;;  %v2052_v9 = vpop.f32.mrb[1].mxu0 }
  0xdd   :  { %v1963_v10 = vmul.f32 -1.442695, %v2458_v8 }
  0xdf   :  { %2263 = vpow2.f32 %v1963_v10 }
  0xe9   :  { %v2264_v11 = vpop.eup %2263 }
  0xea   :  { %v121_v12 = vadd.f32 1.0, %v2264_v11 }
  0xec   :  { %2265 = vrcp.f32 %v121_v12 }
  0xf6   :  { %v2266_v14 = vpop.eup %2265 }
  0xf7   :  { %v125_v15 = vmul.f32 %v2266_v14, %v35_v13  ;;  %v132_v31 = vsub.f32 1.0, %v2266_v14  ;;  %v138_v34 = vmul.f32 0.0, %v2266_v14 }
  0xf9   :  { %127 = vrot.lane.b32.xlu0 %v125_v15, %s2415_s21 }
 0x16b   :  { %v128_v16 = vpop.permute.xlu0 %127 }
 0x16c   :  { %v130_v17 = vadd.f32 %v128_v16, %v2458_v8 }
 0x16e   :  { %2267 = vtanh.f32 %v130_v17  ;;  %v25_v17 = vld [vmem:[%s2833_s1 + $0x60] sm:$0xff] }
 0x16f   :  { %v2546_v20 = vpack.c.bf16 %v26_v18, %v25_v17 }
 0x171   :  { %2154 = vmatpush3.bf16.msra.mxu0 %v2546_v20 }
 0x172   :  { %2155 = vmatprep.subr.bf16.mxu0 %v2412_v2 }
 0x175   :  { %2157 = vmatpush3.bf16.msra.mxu0 %v2552_v23 }
 0x176   :  { %2166 = vmatprep.subr.bf16.mxu0 %v2412_v2 }
 0x178   :  { %v2268_v30 = vpop.eup %2267 }
 0x179   :  { %134 = vrot.lane.b32.xlu0 %v2268_v30, %s2416_s11 }
 0x1eb   :  { %v135_v32 = vpop.permute.xlu0 %134 }
 0x1ec   :  { %v137_v33 = vmul.f32 %v135_v32, %v132_v31 }
 0x1ee   :  { %v139_v35 = vadd.f32 %v138_v34, %v137_v33 }
 0x1f0   :  { %141 = vrot.lane.b32.xlu1 %v139_v35, %s2416_s11  ;;  %v363_v7 = vrot.slane %v139_v35, 7 }
 0x1f4   :  { %341 = vrot.lane.b32.xlu1 %v35_v13, %s2417_s12 }
 0x262   :  { %v142_v36 = vpop.permute.xlu1 %141 }
 0x263   :  { %1964 = vmatmul.mubr.msk.f32.vlgmr.msra.gmra.mrb[0].mxu1 %vm143_vm2, %v142_v36 }
 0x264   :  { %2161 = vmatpush1.bf16.msra.mxu1 %v2486_v25  ;;  %437 = vmatprep.mubr.f32.mxu1 %v2414_v4 }
 0x265   :  { %2163 = vmatprep.subr.bf16.mxu1 %v2488_v26 }
 0x266   :  { %v2512_v37 = vpop.permute.xlu1 %341 }
 0x268   :  { %2165 = vmatpush1.bf16.msra.mxu1 %v2498_v29 }
 0x269   :  { %2173 = vmatprep.subr.bf16.mxu1 %v2475_v21 }
 0x336   :  { %v212_v38 = vpop.f32.mrb[0].mxu1 }
 0x337   :  { %v317_v39 = vrot.slane %v212_v38, 7  ;;  %v214_v40 = vpop.f32.mrb[1].mxu1  ;;  %v217_v53 = vadd.f32 %v212_v38, %v2523_v52 }
 0x338   :  { %v344_v41 = vadd.f32 %v2512_v37, %v214_v40  ;;  %v329_v43 = vrot.slane %v214_v40, 7 }
 0x339   :  { %318 = vrot.lane.b32.xlu0 %v317_v39, %s2417_s12  ;;  %v1965_v54 = vmul.f32 -1.442695, %v217_v53 }
 0x33a   :  { %v346_v42 = vrot.slane %v344_v41, 7 }
 0x33c   :  { %347 = vrot.lane.b32.xlu1 %v346_v42, %s2416_s11 }
 0x340   :  { %330 = vrot.lane.b32.xlu1 %v329_v43, %s2417_s12 }
 0x3ab   :  { %v319_v44 = vpop.permute.xlu0 %318 }
 0x3ac   :  { %v321_v45 = vadd.f32 %v319_v44, %v2458_v8 }
 0x3ae   :  { %v1967_v46 = vmul.f32 -1.442695, %v321_v45  ;;  %v348_v50 = vpop.permute.xlu1 %347 }
 0x3b0   :  { %2269 = vpow2.f32 %v1967_v46 }
 0x3b2   :  { %v331_v63 = vpop.permute.xlu1 %330 }
 0x3b3   :  { %v333_v0 = vadd.f32 %v331_v63, %v2458_v8 }
 0x3b5   :  { %v1968_v1 = vmul.f32 -1.442695, %v333_v0 }
 0x3ba   :  { %v2270_v47 = vpop.eup %2269 }
 0x3bb   :  { %v325_v48 = vadd.f32 1.0, %v2270_v47 }
 0x3bd   :  { %2271 = vrcp.f32 %v325_v48 }
 0x3be   :  { %2273 = vpow2.f32 %v1965_v54 }
 0x3c7   :  { %v2272_v49 = vpop.eup %2271 }
 0x3c8   :  { %v350_v51 = vmul.f32 %v2272_v49, %v348_v50  ;;  %v2274_v55 = vpop.eup %2273 }
 0x3c9   :  { %v222_v56 = vadd.f32 1.0, %v2274_v55 }
 0x3ca   :  { %352 = vrot.lane.b32.xlu0 %v350_v51, %s2415_s21 }
 0x3cb   :  { %2275 = vrcp.f32 %v222_v56 }
 0x3d5   :  { %v2276_v59 = vpop.eup %2275 }
 0x3d6   :  { %v226_v62 = vmul.f32 %v2276_v59, %v36_v61  ;;  %v233_v28 = vsub.f32 1.0, %v2276_v59  ;;  %v239_v31 = vmul.f32 0.0, %v2276_v59 }
 0x43c   :  { %v353_v57 = vpop.permute.xlu0 %352 }
 0x43d   :  { %v355_v58 = vadd.f32 %v353_v57, %v2458_v8 }
 0x43f   :  { %2277 = vtanh.f32 %v355_v58 }
 0x440   :  { %2279 = vpow2.f32 %v1968_v1 }
 0x449   :  { %v2278_v60 = vpop.eup %2277 }
 0x44a   :  { %359 = vrot.lane.b32.xlu0 %v2278_v60, %s2416_s11  ;;  %v2280_v3 = vpop.eup %2279 }
 0x44b   :  { %v337_v5 = vadd.f32 1.0, %v2280_v3 }
 0x44d   :  { %2281 = vrcp.f32 %v337_v5 }
 0x44e   :  { %228 = vrot.lane.b32.xlu0 %v226_v62, %s2415_s21 }
 0x457   :  { %v2282_v6 = vpop.eup %2281 }
 0x458   :  { %v357_v9 = vsub.f32 1.0, %v2282_v6  ;;  %v365_v12 = vmul.f32 %v2282_v6, %v363_v7 }
 0x4bc   :  { %v360_v10 = vpop.permute.xlu0 %359 }
 0x4bd   :  { %v362_v11 = vmul.f32 %v360_v10, %v357_v9 }
 0x4bf   :  { %v2533_v13 = vadd.f32 %v365_v12, %v362_v11 }
 0x4c0   :  { %v229_v14 = vpop.permute.xlu0 %228 }
 0x4c1   :  { %v231_v15 = vadd.f32 %v229_v14, %v217_v53  ;;  %v368_v16 = vrot.slane %v2533_v13, 1 }
 0x4c3   :  { %2283 = vtanh.f32 %v231_v15  ;;  %369 = vrot.lane.b32.xlu1 %v368_v16, %s2416_s11  ;;  %v594_v15 = vrot.slane %v2533_v13, 7 }
 0x4cd   :  { %v2284_v24 = vpop.eup %2283 }
 0x4ce   :  { %235 = vrot.lane.b32.xlu1 %v2284_v24, %s2416_s11 }
 0x535   :  { %v370_v27 = vpop.permute.xlu1 %369 }
 0x536   :  { %1969 = vmatmul.mubr.msk.f32.vlgmr.msra.gmra.mrb[2].mxu1 %vm143_vm2, %v370_v27 }
 0x537   :  { %2175 = vmatpush1.bf16.msra.mxu1 %v2486_v25  ;;  %668 = vmatprep.mubr.f32.mxu1 %v2414_v4 }
 0x538   :  { %2177 = vmatprep.subr.bf16.mxu1 %v2488_v26 }
 0x53b   :  { %2179 = vmatpush1.bf16.msra.mxu1 %v2498_v29 }
 0x53c   :  { %2187 = vmatprep.subr.bf16.mxu1 %v2475_v21 }
 0x540   :  { %v236_v30 = vpop.permute.xlu1 %235 }
 0x541   :  { %v238_v32 = vmul.f32 %v236_v30, %v233_v28 }
 0x543   :  { %v2564_v33 = vadd.f32 %v239_v31, %v238_v32 }
 0x545   :  { %242 = vrot.lane.b32.xlu0 %v2564_v33, %s2416_s11 }
 0x5b7   :  { %v243_v34 = vpop.permute.xlu0 %242 }
 0x5b8   :  { %2062 = vmatmul.mubr.msk.f32.vlgmr.msra.gmra.mrb[2].mxu0 %vm143_vm2, %v243_v34 }
 0x5b9   :  { %2168 = vmatpush3.bf16.msra.mxu0 %v2546_v20  ;;  %2072 = vmatprep.mubr.msk.f32.mxu0 %vm2413_vm0, %v2414_v4 }
 0x5ba   :  { %2169 = vmatprep.subr.bf16.mxu0 %v2412_v2 }
 0x5bd   :  { %2171 = vmatpush3.bf16.msra.mxu0 %v2552_v23 }
 0x5be   :  { %2180 = vmatprep.subr.bf16.mxu0 %v2412_v2 }
 0x609   :  { %v439_v35 = vpop.f32.mrb[2].mxu1 }
 0x60a   :  { %v552_v36 = vrot.slane %v439_v35, 6  ;;  %v441_v38 = vpop.f32.mrb[3].mxu1  ;;  %v444_v55 = vadd.f32 %v439_v35, %v2523_v52 }
 0x60b   :  { %v575_v39 = vadd.f32 %v441_v38, %v2512_v37  ;;  %v564_v54 = vrot.slane %v441_v38, 6 }
 0x60c   :  { %553 = vrot.lane.b32.xlu1 %v552_v36, %s2417_s12 }
 0x60d   :  { %v577_v40 = vrot.slane %v575_v39, 6 }
 0x60f   :  { %578 = vrot.lane.b32.xlu0 %v577_v40, %s2416_s11 }
 0x613   :  { %453 = vrot.lane.b32.xlu0 %v36_v61, %s2415_s21 }
 0x67e   :  { %v554_v41 = vpop.permute.xlu1 %553 }
 0x67f   :  { %v556_v42 = vadd.f32 %v554_v41, %v2458_v8 }
 0x681   :  { %v1972_v43 = vmul.f32 -1.442695, %v556_v42  ;;  %v579_v44 = vpop.permute.xlu0 %578 }
 0x683   :  { %2285 = vpow2.f32 %v1972_v43 }
 0x685   :  { %v2580_v45 = vpop.permute.xlu0 %453 }
 0x68b   :  { %v312_v46 = vpop.f32.mrb[2].mxu0 }
 0x68c   :  { %v456_v47 = vadd.f32 %v2580_v45, %v312_v46  ;;  %v2063_v48 = vpop.f32.mrb[3].mxu0  ;;  %v445_v56 = vadd.f32 %v444_v55, %v312_v46 }
 0x68d   :  { %v2286_v49 = vpop.eup %2285 }
 0x68e   :  { %v560_v50 = vadd.f32 1.0, %v2286_v49  ;;  %458 = vrot.lane.b32.xlu0 %v456_v47, %s2415_s21  ;;  %v1970_v57 = vmul.f32 -1.442695, %v445_v56 }
 0x690   :  { %2287 = vrcp.f32 %v560_v50 }
 0x691   :  { %2289 = vpow2.f32 %v1970_v57 }
 0x69a   :  { %v2288_v51 = vpop.eup %2287 }
 0x69b   :  { %v581_v53 = vmul.f32 %v2288_v51, %v579_v44  ;;  %v2290_v58 = vpop.eup %2289 }
 0x69c   :  { %v449_v59 = vadd.f32 1.0, %v2290_v58 }
 0x69d   :  { %583 = vrot.lane.b32.xlu1 %v581_v53, %s2415_s21 }
 0x69e   :  { %2291 = vrcp.f32 %v449_v59 }
 0x6a1   :  { %565 = vrot.lane.b32.xlu1 %v564_v54, %s2417_s12 }
 0x6a8   :  { %v2292_v60 = vpop.eup %2291 }
 0x6a9   :  { %v468_v27 = vsub.f32 1.0, %v2292_v60  ;;  %v474_v30 = vmul.f32 %v2292_v60, %v2564_v33 }
 0x700   :  { %v459_v61 = vpop.permute.xlu0 %458 }
 0x701   :  { %v461_v62 = vmul.f32 %v2292_v60, %v459_v61 }
 0x703   :  { %463 = vrot.lane.b32.xlu0 %v461_v62, %s2415_s21 }
 0x70f   :  { %v584_v63 = vpop.permute.xlu1 %583 }
 0x710   :  { %v586_v0 = vadd.f32 %v584_v63, %v2458_v8 }
 0x712   :  { %2293 = vtanh.f32 %v586_v0 }
 0x713   :  { %v566_v3 = vpop.permute.xlu1 %565 }
 0x714   :  { %v568_v5 = vadd.f32 %v566_v3, %v2458_v8 }
 0x716   :  { %v1973_v6 = vmul.f32 -1.442695, %v568_v5 }
 0x718   :  { %2295 = vpow2.f32 %v1973_v6 }
 0x71c   :  { %v2294_v1 = vpop.eup %2293 }
 0x71d   :  { %590 = vrot.lane.b32.xlu1 %v2294_v1, %s2416_s11 }
 0x722   :  { %v2296_v10 = vpop.eup %2295 }
 0x723   :  { %v572_v11 = vadd.f32 1.0, %v2296_v10 }
 0x775   :  { %v464_v7 = vpop.permute.xlu0 %463 }
 0x776   :  { %v466_v9 = vadd.f32 %v464_v7, %v444_v55 }
 0x778   :  { %2297 = vtanh.f32 %v466_v9 }
 0x779   :  { %2299 = vrcp.f32 %v572_v11 }
 0x782   :  { %v2298_v12 = vpop.eup %2297 }
 0x783   :  { %470 = vrot.lane.b32.xlu0 %v2298_v12, %s2416_s11  ;;  %v2300_v14 = vpop.eup %2299 }
 0x784   :  { %v588_v16 = vsub.f32 1.0, %v2300_v14  ;;  %v596_v18 = vmul.f32 %v2300_v14, %v594_v15 }
 0x78f   :  { %v591_v17 = vpop.permute.xlu1 %590 }
 0x790   :  { %v593_v19 = vmul.f32 %v591_v17, %v588_v16 }
 0x792   :  { %v2593_v22 = vadd.f32 %v596_v18, %v593_v19 }
 0x794   :  { %v599_v24 = vrot.slane %v2593_v22, 2  ;;  %v821_v15 = vrot.slane %v2593_v22, 7 }
 0x796   :  { %600 = vrot.lane.b32.xlu1 %v599_v24, %s2416_s11 }
 0x7f5   :  { %v471_v28 = vpop.permute.xlu0 %470 }
 0x7f6   :  { %v473_v31 = vmul.f32 %v471_v28, %v468_v27 }
 0x7f8   :  { %v2598_v32 = vadd.f32 %v474_v30, %v473_v31 }
 0x7fa   :  { %477 = vrot.lane.b32.xlu1 %v2598_v32, %s2416_s11 }
 0x808   :  { %v601_v13 = vpop.permute.xlu1 %600 }
 0x809   :  { %1974 = vmatmul.mubr.msk.f32.vlgmr.msra.gmra.mrb[4].mxu1 %vm143_vm2, %v601_v13 }
 0x80a   :  { %2189 = vmatpush1.bf16.msra.mxu1 %v2486_v25  ;;  %895 = vmatprep.mubr.f32.mxu1 %v2414_v4 }
 0x80b   :  { %2191 = vmatprep.subr.bf16.mxu1 %v2488_v26 }
 0x80e   :  { %2193 = vmatpush1.bf16.msra.mxu1 %v2498_v29 }
 0x80f   :  { %2201 = vmatprep.subr.bf16.mxu1 %v2475_v21 }
 0x86c   :  { %v478_v34 = vpop.permute.xlu1 %477 }
 0x86d   :  { %2073 = vmatmul.mubr.msk.f32.vlgmr.msra.gmra.mrb[4].mxu0 %vm143_vm2, %v478_v34 }
 0x86e   :  { %2182 = vmatpush3.bf16.msra.mxu0 %v2546_v20  ;;  %2083 = vmatprep.mubr.msk.f32.mxu0 %vm2413_vm0, %v2414_v4 }
 0x86f   :  { %2183 = vmatprep.subr.bf16.mxu0 %v2412_v2 }
 0x872   :  { %2185 = vmatpush3.bf16.msra.mxu0 %v2552_v23 }
 0x873   :  { %2194 = vmatprep.subr.bf16.mxu0 %v2412_v2 }
 0x8dc   :  { %v670_v35 = vpop.f32.mrb[4].mxu1 }
 0x8dd   :  { %v779_v36 = vrot.slane %v670_v35, 5  ;;  %v672_v38 = vpop.f32.mrb[5].mxu1  ;;  %v675_v55 = vadd.f32 %v670_v35, %v2523_v52 }
 0x8de   :  { %v802_v39 = vadd.f32 %v672_v38, %v2512_v37  ;;  %v791_v54 = vrot.slane %v672_v38, 5 }
 0x8df   :  { %780 = vrot.lane.b32.xlu0 %v779_v36, %s2417_s12 }
 0x8e0   :  { %v804_v40 = vrot.slane %v802_v39, 5 }
 0x8e2   :  { %805 = vrot.lane.b32.xlu1 %v804_v40, %s2416_s11 }
 0x940   :  { %v547_v41 = vpop.f32.mrb[4].mxu0 }
 0x941   :  { %v683_v42 = vadd.f32 %v547_v41, %v2580_v45  ;;  %v2074_v43 = vpop.f32.mrb[5].mxu0  ;;  %v676_v56 = vadd.f32 %v675_v55, %v547_v41 }
 0x943   :  { %685 = vrot.lane.b32.xlu1 %v683_v42, %s2415_s21  ;;  %v1975_v57 = vmul.f32 -1.442695, %v676_v56 }
 0x951   :  { %v781_v44 = vpop.permute.xlu0 %780 }
 0x952   :  { %v783_v46 = vadd.f32 %v781_v44, %v2458_v8 }
 0x954   :  { %v1977_v47 = vmul.f32 -1.442695, %v783_v46  ;;  %v806_v51 = vpop.permute.xlu1 %805 }
 0x956   :  { %2301 = vpow2.f32 %v1977_v47 }
 0x960   :  { %v2302_v48 = vpop.eup %2301 }
 0x961   :  { %v787_v49 = vadd.f32 1.0, %v2302_v48 }
 0x963   :  { %2303 = vrcp.f32 %v787_v49 }
 0x964   :  { %2305 = vpow2.f32 %v1975_v57 }
 0x96d   :  { %v2304_v50 = vpop.eup %2303 }
 0x96e   :  { %v808_v53 = vmul.f32 %v2304_v50, %v806_v51  ;;  %v2306_v58 = vpop.eup %2305 }
 0x96f   :  { %v680_v59 = vadd.f32 1.0, %v2306_v58 }
 0x970   :  { %810 = vrot.lane.b32.xlu0 %v808_v53, %s2415_s21 }
 0x971   :  { %2307 = vrcp.f32 %v680_v59 }
 0x974   :  { %792 = vrot.lane.b32.xlu0 %v791_v54, %s2417_s12 }
 0x97b   :  { %v2308_v60 = vpop.eup %2307 }
 0x97c   :  { %v695_v28 = vsub.f32 1.0, %v2308_v60  ;;  %v701_v31 = vmul.f32 %v2308_v60, %v2598_v32 }
 0x9b5   :  { %v686_v61 = vpop.permute.xlu1 %685 }
 0x9b6   :  { %v688_v62 = vmul.f32 %v2308_v60, %v686_v61 }
 0x9b8   :  { %690 = vrot.lane.b32.xlu0 %v688_v62, %s2415_s21 }
 0x9e2   :  { %v811_v63 = vpop.permute.xlu0 %810 }
 0x9e3   :  { %v813_v0 = vadd.f32 %v811_v63, %v2458_v8 }
 0x9e5   :  { %2309 = vtanh.f32 %v813_v0 }
 0x9e6   :  { %v793_v3 = vpop.permute.xlu0 %792 }
 0x9e7   :  { %v795_v9 = vadd.f32 %v793_v3, %v2458_v8 }
 0x9e9   :  { %v1978_v10 = vmul.f32 -1.442695, %v795_v9 }
 0x9ef   :  { %v2310_v1 = vpop.eup %2309 }
 0x9f0   :  { %817 = vrot.lane.b32.xlu1 %v2310_v1, %s2416_s11 }
 0xa2a   :  { %v691_v5 = vpop.permute.xlu0 %690 }
 0xa2b   :  { %v693_v6 = vadd.f32 %v691_v5, %v675_v55 }
 0xa2d   :  { %2311 = vtanh.f32 %v693_v6 }
 0xa2e   :  { %2313 = vpow2.f32 %v1978_v10 }
 0xa37   :  { %v2312_v7 = vpop.eup %2311 }
 0xa38   :  { %697 = vrot.lane.b32.xlu0 %v2312_v7, %s2416_s11  ;;  %v2314_v11 = vpop.eup %2313 }
 0xa39   :  { %v799_v12 = vadd.f32 1.0, %v2314_v11 }
 0xa3b   :  { %2315 = vrcp.f32 %v799_v12 }
 0xa45   :  { %v2316_v14 = vpop.eup %2315 }
 0xa46   :  { %v815_v16 = vsub.f32 1.0, %v2316_v14  ;;  %v823_v18 = vmul.f32 %v2316_v14, %v821_v15 }
 0xa62   :  { %v818_v17 = vpop.permute.xlu1 %817 }
 0xa63   :  { %v820_v19 = vmul.f32 %v818_v17, %v815_v16 }
 0xa65   :  { %v2630_v24 = vadd.f32 %v823_v18, %v820_v19 }
 0xa67   :  { %v826_v27 = vrot.slane %v2630_v24, 3  ;;  %v1048_v16 = vrot.slane %v2630_v24, 7 }
 0xa69   :  { %827 = vrot.lane.b32.xlu1 %v826_v27, %s2416_s11 }
 0xaaa   :  { %v698_v30 = vpop.permute.xlu0 %697 }
 0xaab   :  { %v700_v13 = vmul.f32 %v698_v30, %v695_v28 }
 0xaad   :  { %v2635_v34 = vadd.f32 %v701_v31, %v700_v13 }
 0xaaf   :  { %704 = vrot.lane.b32.xlu1 %v2635_v34, %s2416_s11 }
 0xadb   :  { %v828_v22 = vpop.permute.xlu1 %827 }
 0xadc   :  { %1979 = vmatmul.mubr.msk.f32.vlgmr.msra.gmra.mrb[6].mxu1 %vm143_vm2, %v828_v22 }
 0xadd   :  { %2203 = vmatpush1.bf16.msra.mxu1 %v2486_v25  ;;  %1122 = vmatprep.mubr.f32.mxu1 %v2414_v4 }
 0xade   :  { %2205 = vmatprep.subr.bf16.mxu1 %v2488_v26 }
 0xae1   :  { %2207 = vmatpush1.bf16.msra.mxu1 %v2498_v29 }
 0xae2   :  { %2215 = vmatprep.subr.bf16.mxu1 %v2475_v21 }
 0xb21   :  { %v705_v35 = vpop.permute.xlu1 %704 }
 0xb22   :  { %2084 = vmatmul.mubr.msk.f32.vlgmr.msra.gmra.mrb[6].mxu0 %vm143_vm2, %v705_v35 }
 0xb23   :  { %2196 = vmatpush3.bf16.msra.mxu0 %v2546_v20  ;;  %2094 = vmatprep.mubr.msk.f32.mxu0 %vm2413_vm0, %v2414_v4 }
 0xb24   :  { %2197 = vmatprep.subr.bf16.mxu0 %v2412_v2 }
 0xb27   :  { %2199 = vmatpush3.bf16.msra.mxu0 %v2552_v23 }
 0xb28   :  { %2208 = vmatprep.subr.bf16.mxu0 %v2412_v2 }
 0xbaf   :  { %v897_v36 = vpop.f32.mrb[6].mxu1 }
 0xbb0   :  { %v1006_v38 = vrot.slane %v897_v36, 4  ;;  %v899_v39 = vpop.f32.mrb[7].mxu1  ;;  %v902_v55 = vadd.f32 %v897_v36, %v2523_v52 }
 0xbb1   :  { %v1029_v40 = vadd.f32 %v899_v39, %v2512_v37  ;;  %v1018_v56 = vrot.slane %v899_v39, 4 }
 0xbb2   :  { %1007 = vrot.lane.b32.xlu0 %v1006_v38, %s2417_s12 }
 0xbb3   :  { %v1031_v41 = vrot.slane %v1029_v40, 4 }
 0xbb5   :  { %1032 = vrot.lane.b32.xlu1 %v1031_v41, %s2416_s11 }
 0xbf5   :  { %v774_v42 = vpop.f32.mrb[6].mxu0 }
 0xbf6   :  { %v910_v43 = vadd.f32 %v774_v42, %v2580_v45  ;;  %v2085_v44 = vpop.f32.mrb[7].mxu0  ;;  %v903_v57 = vadd.f32 %v902_v55, %v774_v42 }
 0xbf8   :  { %912 = vrot.lane.b32.xlu1 %v910_v43, %s2415_s21  ;;  %v1980_v58 = vmul.f32 -1.442695, %v903_v57 }
 0xc24   :  { %v1008_v46 = vpop.permute.xlu0 %1007 }
 0xc25   :  { %v1010_v47 = vadd.f32 %v1008_v46, %v2458_v8 }
 0xc27   :  { %v1982_v48 = vmul.f32 -1.442695, %v1010_v47  ;;  %v1033_v53 = vpop.permute.xlu1 %1032 }
 0xc29   :  { %2317 = vpow2.f32 %v1982_v48 }
 0xc33   :  { %v2318_v49 = vpop.eup %2317 }
 0xc34   :  { %v1014_v50 = vadd.f32 1.0, %v2318_v49 }
 0xc36   :  { %2319 = vrcp.f32 %v1014_v50 }
 0xc37   :  { %2321 = vpow2.f32 %v1980_v58 }
 0xc40   :  { %v2320_v51 = vpop.eup %2319 }
 0xc41   :  { %v1035_v54 = vmul.f32 %v2320_v51, %v1033_v53  ;;  %v2322_v59 = vpop.eup %2321 }
 0xc42   :  { %v907_v60 = vadd.f32 1.0, %v2322_v59 }
 0xc43   :  { %1037 = vrot.lane.b32.xlu0 %v1035_v54, %s2415_s21 }
 0xc44   :  { %2323 = vrcp.f32 %v907_v60 }
 0xc47   :  { %1019 = vrot.lane.b32.xlu0 %v1018_v56, %s2417_s12 }
 0xc4e   :  { %v2324_v61 = vpop.eup %2323 }
 0xc4f   :  { %v922_v31 = vsub.f32 1.0, %v2324_v61  ;;  %v928_v22 = vmul.f32 %v2324_v61, %v2635_v34 }
 0xc6a   :  { %v913_v62 = vpop.permute.xlu1 %912 }
 0xc6b   :  { %v915_v63 = vmul.f32 %v2324_v61, %v913_v62 }
 0xc6d   :  { %917 = vrot.lane.b32.xlu1 %v915_v63, %s2415_s21 }
 0xcb5   :  { %v1038_v0 = vpop.permute.xlu0 %1037 }
 0xcb6   :  { %v1040_v1 = vadd.f32 %v1038_v0, %v2458_v8 }
 0xcb8   :  { %2325 = vtanh.f32 %v1040_v1 }
 0xcb9   :  { %v1020_v9 = vpop.permute.xlu0 %1019 }
 0xcba   :  { %v1022_v10 = vadd.f32 %v1020_v9, %v2458_v8 }
 0xcbc   :  { %v1983_v11 = vmul.f32 -1.442695, %v1022_v10 }
 0xcc2   :  { %v2326_v3 = vpop.eup %2325 }
 0xcc3   :  { %1044 = vrot.lane.b32.xlu0 %v2326_v3, %s2416_s11 }
 0xcdf   :  { %v918_v5 = vpop.permute.xlu1 %917 }
 0xce0   :  { %v920_v6 = vadd.f32 %v918_v5, %v902_v55 }
 0xce2   :  { %2327 = vtanh.f32 %v920_v6 }
 0xce3   :  { %2329 = vpow2.f32 %v1983_v11 }
 0xcec   :  { %v2328_v7 = vpop.eup %2327 }
 0xced   :  { %924 = vrot.lane.b32.xlu1 %v2328_v7, %s2416_s11  ;;  %v2330_v12 = vpop.eup %2329 }
 0xcee   :  { %v1026_v14 = vadd.f32 1.0, %v2330_v12 }
 0xcf0   :  { %2331 = vrcp.f32 %v1026_v14 }
 0xcfa   :  { %v2332_v15 = vpop.eup %2331 }
 0xcfb   :  { %v1042_v17 = vsub.f32 1.0, %v2332_v15  ;;  %v1050_v19 = vmul.f32 %v2332_v15, %v1048_v16 }
 0xd35   :  { %v1045_v18 = vpop.permute.xlu0 %1044 }
 0xd36   :  { %v1047_v27 = vmul.f32 %v1045_v18, %v1042_v17 }
 0xd38   :  { %v2667_v28 = vadd.f32 %v1050_v19, %v1047_v27 }
 0xd3a   :  { %v1053_v30 = vrot.slane %v2667_v28, 4  ;;  %v1275_v18 = vrot.slane %v2667_v28, 7 }
 0xd3c   :  { %1054 = vrot.lane.b32.xlu0 %v1053_v30, %s2416_s11 }
 0xd5f   :  { %v925_v13 = vpop.permute.xlu1 %924 }
 0xd60   :  { %v927_v35 = vmul.f32 %v925_v13, %v922_v31 }
 0xd62   :  { %v2672_v36 = vadd.f32 %v928_v22, %v927_v35 }
 0xd64   :  { %931 = vrot.lane.b32.xlu1 %v2672_v36, %s2416_s11 }
 0xdae   :  { %v1055_v24 = vpop.permute.xlu0 %1054 }
 0xdaf   :  { %1984 = vmatmul.mubr.msk.f32.vlgmr.msra.gmra.mrb[8].mxu1 %vm143_vm2, %v1055_v24 }
 0xdb0   :  { %2217 = vmatpush1.bf16.msra.mxu1 %v2486_v25  ;;  %1349 = vmatprep.mubr.f32.mxu1 %v2414_v4 }
 0xdb1   :  { %2219 = vmatprep.subr.bf16.mxu1 %v2488_v26 }
 0xdb4   :  { %2221 = vmatpush1.bf16.msra.mxu1 %v2498_v29 }
 0xdb5   :  { %2229 = vmatprep.subr.bf16.mxu1 %v2475_v21 }
 0xdd6   :  { %v932_v38 = vpop.permute.xlu1 %931 }
 0xdd7   :  { %2095 = vmatmul.mubr.msk.f32.vlgmr.msra.gmra.mrb[8].mxu0 %vm143_vm2, %v932_v38 }
 0xdd8   :  { %2210 = vmatpush3.bf16.msra.mxu0 %v2546_v20  ;;  %2105 = vmatprep.mubr.msk.f32.mxu0 %vm2413_vm0, %v2414_v4 }
 0xdd9   :  { %2211 = vmatprep.subr.bf16.mxu0 %v2412_v2 }
 0xddc   :  { %2213 = vmatpush3.bf16.msra.mxu0 %v2552_v23 }
 0xddd   :  { %2222 = vmatprep.subr.bf16.mxu0 %v2412_v2 }
 0xe82   :  { %v1124_v39 = vpop.f32.mrb[8].mxu1 }
 0xe83   :  { %v1233_v40 = vrot.slane %v1124_v39, 3  ;;  %v1126_v41 = vpop.f32.mrb[9].mxu1  ;;  %v1129_v50 = vadd.f32 %v1124_v39, %v2523_v52 }
 0xe84   :  { %v1256_v42 = vadd.f32 %v1126_v41, %v2512_v37  ;;  %v1245_v62 = vrot.slane %v1126_v41, 3 }
 0xe85   :  { %1234 = vrot.lane.b32.xlu0 %v1233_v40, %s2417_s12 }
 0xe86   :  { %v1258_v43 = vrot.slane %v1256_v42, 3 }
 0xe88   :  { %1259 = vrot.lane.b32.xlu1 %v1258_v43, %s2416_s11 }
 0xeaa   :  { %v1001_v44 = vpop.f32.mrb[8].mxu0 }
 0xeab   :  { %v1137_v46 = vadd.f32 %v1001_v44, %v2580_v45  ;;  %v2096_v47 = vpop.f32.mrb[9].mxu0  ;;  %v1130_v53 = vadd.f32 %v1129_v50, %v1001_v44 }
 0xead   :  { %1139 = vrot.lane.b32.xlu0 %v1137_v46, %s2415_s21  ;;  %v1985_v54 = vmul.f32 -1.442695, %v1130_v53 }
 0xef7   :  { %v1235_v48 = vpop.permute.xlu0 %1234 }
 0xef8   :  { %v1237_v49 = vadd.f32 %v1235_v48, %v2458_v8 }
 0xefa   :  { %v1987_v51 = vmul.f32 -1.442695, %v1237_v49  ;;  %v1260_v60 = vpop.permute.xlu1 %1259 }
 0xefc   :  { %2333 = vpow2.f32 %v1987_v51 }
 0xefd   :  { %2335 = vpow2.f32 %v1985_v54 }
 0xf06   :  { %v2334_v55 = vpop.eup %2333 }
 0xf07   :  { %v1241_v56 = vadd.f32 1.0, %v2334_v55  ;;  %v2336_v57 = vpop.eup %2335 }
 0xf08   :  { %v1134_v58 = vadd.f32 1.0, %v2336_v57 }
 0xf09   :  { %2337 = vrcp.f32 %v1241_v56 }
 0xf0a   :  { %2339 = vrcp.f32 %v1134_v58 }
 0xf13   :  { %v2338_v59 = vpop.eup %2337 }
 0xf14   :  { %v1262_v61 = vmul.f32 %v2338_v59, %v1260_v60  ;;  %v2340_v63 = vpop.eup %2339 }
 0xf15   :  { %v1149_v35 = vsub.f32 1.0, %v2340_v63  ;;  %v1155_v38 = vmul.f32 %v2340_v63, %v2672_v36 }
 0xf16   :  { %1264 = vrot.lane.b32.xlu1 %v1262_v61, %s2415_s21 }
 0xf1a   :  { %1246 = vrot.lane.b32.xlu1 %v1245_v62, %s2417_s12 }
 0xf1f   :  { %v1140_v0 = vpop.permute.xlu0 %1139 }
 0xf20   :  { %v1142_v1 = vmul.f32 %v2340_v63, %v1140_v0 }
 0xf22   :  { %1144 = vrot.lane.b32.xlu0 %v1142_v1, %s2415_s21 }
 0xf88   :  { %v1265_v3 = vpop.permute.xlu1 %1264 }
 0xf89   :  { %v1267_v5 = vadd.f32 %v1265_v3, %v2458_v8 }
 0xf8b   :  { %2341 = vtanh.f32 %v1267_v5 }
 0xf8c   :  { %v1247_v11 = vpop.permute.xlu1 %1246 }
 0xf8d   :  { %v1249_v12 = vadd.f32 %v1247_v11, %v2458_v8 }
 0xf8f   :  { %v1988_v14 = vmul.f32 -1.442695, %v1249_v12 }
 0xf94   :  { %v1145_v6 = vpop.permute.xlu0 %1144 }
 0xf95   :  { %v2342_v7 = vpop.eup %2341  ;;  %v1147_v9 = vadd.f32 %v1145_v6, %v1129_v50 }
 0xf96   :  { %1271 = vrot.lane.b32.xlu0 %v2342_v7, %s2416_s11 }
 0xf97   :  { %2343 = vtanh.f32 %v1147_v9 }
 0xf98   :  { %2345 = vpow2.f32 %v1988_v14 }
 0xfa1   :  { %v2344_v10 = vpop.eup %2343 }
 0xfa2   :  { %1151 = vrot.lane.b32.xlu1 %v2344_v10, %s2416_s11  ;;  %v2346_v15 = vpop.eup %2345 }
 0xfa3   :  { %v1253_v16 = vadd.f32 1.0, %v2346_v15 }
 0xfa5   :  { %2347 = vrcp.f32 %v1253_v16 }
 0xfaf   :  { %v2348_v17 = vpop.eup %2347 }
 0xfb0   :  { %v1269_v19 = vsub.f32 1.0, %v2348_v17  ;;  %v1277_v30 = vmul.f32 %v2348_v17, %v1275_v18 }
0x1008   :  { %v1272_v27 = vpop.permute.xlu0 %1271 }
0x1009   :  { %v1274_v31 = vmul.f32 %v1272_v27, %v1269_v19 }
0x100b   :  { %v2704_v13 = vadd.f32 %v1277_v30, %v1274_v31 }
0x100d   :  { %v1280_v22 = vrot.slane %v2704_v13, 5 }
0x100f   :  { %1281 = vrot.lane.b32.xlu0 %v1280_v22, %s2416_s11 }
0x1014   :  { %v1152_v24 = vpop.permute.xlu1 %1151 }
0x1015   :  { %v1154_v39 = vmul.f32 %v1152_v24, %v1149_v35  ;;  %v1502_v24 = vrot.slane %v2704_v13, 7 }
0x1017   :  { %v2709_v40 = vadd.f32 %v1155_v38, %v1154_v39 }
0x1019   :  { %1158 = vrot.lane.b32.xlu1 %v2709_v40, %s2416_s11 }
0x1081   :  { %v1282_v28 = vpop.permute.xlu0 %1281 }
0x1082   :  { %1989 = vmatmul.mubr.msk.f32.vlgmr.msra.gmra.mrb[10].mxu1 %vm143_vm2, %v1282_v28 }
0x1083   :  { %2231 = vmatpush1.bf16.msra.mxu1 %v2486_v25  ;;  %1576 = vmatprep.mubr.f32.mxu1 %v2414_v4 }
0x1084   :  { %2233 = vmatprep.subr.bf16.mxu1 %v2488_v26 }
0x1087   :  { %2235 = vmatpush1.bf16.msra.mxu1 %v2498_v29 }
0x1088   :  { %2243 = vmatprep.subr.bf16.mxu1 %v2475_v21 }
0x108b   :  { %v1159_v41 = vpop.permute.xlu1 %1158 }
0x108c   :  { %2106 = vmatmul.mubr.msk.f32.vlgmr.msra.gmra.mrb[10].mxu0 %vm143_vm2, %v1159_v41 }
0x108d   :  { %2224 = vmatpush3.bf16.msra.mxu0 %v2546_v20  ;;  %2116 = vmatprep.mubr.msk.f32.mxu0 %vm2413_vm0, %v2414_v4 }
0x108e   :  { %2225 = vmatprep.subr.bf16.mxu0 %v2412_v2 }
0x1091   :  { %2227 = vmatpush3.bf16.msra.mxu0 %v2552_v23 }
0x1092   :  { %2236 = vmatprep.subr.bf16.mxu0 %v2412_v2 }
0x1155   :  { %v1351_v42 = vpop.f32.mrb[10].mxu1 }
0x1156   :  { %v1460_v43 = vrot.slane %v1351_v42, 2  ;;  %v1353_v44 = vpop.f32.mrb[11].mxu1  ;;  %v1356_v50 = vadd.f32 %v1351_v42, %v2523_v52 }
0x1157   :  { %v1483_v46 = vadd.f32 %v1353_v44, %v2512_v37  ;;  %v1472_v5 = vrot.slane %v1353_v44, 2 }
0x1158   :  { %1461 = vrot.lane.b32.xlu0 %v1460_v43, %s2417_s12 }
0x1159   :  { %v1485_v21 = vrot.slane %v1483_v46, 2 }
0x115b   :  { %1486 = vrot.lane.b32.xlu1 %v1485_v21, %s2416_s11 }
0x115f   :  { %v1228_v47 = vpop.f32.mrb[10].mxu0 }
0x1160   :  { %v1364_v48 = vadd.f32 %v1228_v47, %v2580_v45  ;;  %v2107_v49 = vpop.f32.mrb[11].mxu0  ;;  %v1357_v51 = vadd.f32 %v1356_v50, %v1228_v47 }
0x1162   :  { %1366 = vrot.lane.b32.xlu0 %v1364_v48, %s2415_s21  ;;  %v1990_v53 = vmul.f32 -1.442695, %v1357_v51 }
0x1164   :  { %2349 = vpow2.f32 %v1990_v53 }
0x116e   :  { %v2350_v54 = vpop.eup %2349 }
0x116f   :  { %v1361_v55 = vadd.f32 1.0, %v2350_v54 }
0x1171   :  { %2351 = vrcp.f32 %v1361_v55 }
0x117b   :  { %v2352_v59 = vpop.eup %2351 }
0x117c   :  { %v1376_v18 = vsub.f32 1.0, %v2352_v59  ;;  %v1382_v30 = vmul.f32 %v2352_v59, %v2709_v40 }
0x11ca   :  { %v1462_v56 = vpop.permute.xlu0 %1461 }
0x11cb   :  { %v1464_v57 = vadd.f32 %v1462_v56, %v2458_v8 }
0x11cd   :  { %v1992_v58 = vmul.f32 -1.442695, %v1464_v57  ;;  %v1487_v1 = vpop.permute.xlu1 %1486 }
0x11cf   :  { %2353 = vpow2.f32 %v1992_v58 }
0x11d4   :  { %v1367_v60 = vpop.permute.xlu0 %1366 }
0x11d5   :  { %v1369_v61 = vmul.f32 %v2352_v59, %v1367_v60 }
0x11d7   :  { %1371 = vrot.lane.b32.xlu0 %v1369_v61, %s2415_s21 }
0x11d9   :  { %v2354_v62 = vpop.eup %2353 }
0x11da   :  { %v1468_v63 = vadd.f32 1.0, %v2354_v62 }
0x11dc   :  { %2355 = vrcp.f32 %v1468_v63 }
0x11e6   :  { %v2356_v0 = vpop.eup %2355 }
0x11e7   :  { %v1489_v3 = vmul.f32 %v2356_v0, %v1487_v1 }
0x11e9   :  { %1491 = vrot.lane.b32.xlu1 %v1489_v3, %s2415_s21 }
0x11ed   :  { %1473 = vrot.lane.b32.xlu1 %v1472_v5, %s2417_s12 }
0x1249   :  { %v1372_v6 = vpop.permute.xlu0 %1371 }
0x124a   :  { %v1374_v7 = vadd.f32 %v1372_v6, %v1356_v50 }
0x124c   :  { %2357 = vtanh.f32 %v1374_v7 }
0x1256   :  { %v2358_v9 = vpop.eup %2357 }
0x1257   :  { %1378 = vrot.lane.b32.xlu1 %v2358_v9, %s2416_s11 }
0x125b   :  { %v1492_v10 = vpop.permute.xlu1 %1491 }
0x125c   :  { %v1494_v11 = vadd.f32 %v1492_v10, %v2458_v8 }
0x125e   :  { %2359 = vtanh.f32 %v1494_v11 }
0x125f   :  { %v1474_v14 = vpop.permute.xlu1 %1473 }
0x1260   :  { %v1476_v15 = vadd.f32 %v1474_v14, %v2458_v8 }
0x1262   :  { %v1993_v16 = vmul.f32 -1.442695, %v1476_v15 }
0x1264   :  { %2361 = vpow2.f32 %v1993_v16 }
0x1268   :  { %v2360_v12 = vpop.eup %2359 }
0x1269   :  { %1498 = vrot.lane.b32.xlu0 %v2360_v12, %s2416_s11 }
0x126e   :  { %v2362_v17 = vpop.eup %2361 }
0x126f   :  { %v1480_v19 = vadd.f32 1.0, %v2362_v17 }
0x1271   :  { %2363 = vrcp.f32 %v1480_v19 }
0x127b   :  { %v2364_v35 = vpop.eup %2363 }
0x127c   :  { %v1496_v38 = vsub.f32 1.0, %v2364_v35  ;;  %v1504_v28 = vmul.f32 %v2364_v35, %v1502_v24 }
0x12c9   :  { %v1379_v27 = vpop.permute.xlu1 %1378 }
0x12ca   :  { %v1381_v31 = vmul.f32 %v1379_v27, %v1376_v18 }
0x12cc   :  { %v2741_v22 = vadd.f32 %v1382_v30, %v1381_v31 }
0x12ce   :  { %1385 = vrot.lane.b32.xlu0 %v2741_v22, %s2416_s11 }
0x12db   :  { %v1499_v39 = vpop.permute.xlu0 %1498 }
0x12dc   :  { %v1501_v41 = vmul.f32 %v1499_v39, %v1496_v38 }
0x12de   :  { %v2746_v42 = vadd.f32 %v1504_v28, %v1501_v41 }
0x12e0   :  { %v1507_v43 = vrot.slane %v2746_v42, 6  ;;  %v1729_v30 = vrot.slane %v2746_v42, 7 }
0x12e2   :  { %1508 = vrot.lane.b32.xlu1 %v1507_v43, %s2416_s11 }
0x1340   :  { %v1386_v44 = vpop.permute.xlu0 %1385 }
0x1341   :  { %2117 = vmatmul.mubr.msk.f32.vlgmr.msra.gmra.mrb[12].mxu0 %vm143_vm2, %v1386_v44 }
0x1342   :  { %2238 = vmatpush3.bf16.msra.mxu0 %v2546_v20  ;;  %2127 = vmatprep.mubr.msk.f32.mxu0 %vm2413_vm0, %v2414_v4 }
0x1343   :  { %2239 = vmatprep.subr.bf16.mxu0 %v2412_v2 }
0x1346   :  { %2241 = vmatpush3.bf16.msra.mxu0 %v2552_v23 }
0x1347   :  { %2250 = vmatprep.subr.bf16.mxu0 %v2412_v2 }
0x1354   :  { %v1509_v13 = vpop.permute.xlu1 %1508 }
0x1355   :  { %1994 = vmatmul.mubr.msk.f32.vlgmr.msra.gmra.mrb[12].mxu1 %vm143_vm2, %v1509_v13 }
0x1356   :  { %2245 = vmatpush1.bf16.msra.mxu1 %v2486_v25  ;;  %1803 = vmatprep.mubr.f32.mxu1 %v2414_v4 }
0x1357   :  { %2247 = vmatprep.subr.bf16.mxu1 %v2488_v26 }
0x135a   :  { %2249 = vmatpush1.bf16.msra.mxu1 %v2498_v29 }
0x1414   :  { %v1455_v20 = vpop.f32.mrb[12].mxu0 }
0x1415   :  { %v1591_v46 = vadd.f32 %v1455_v20, %v2580_v45  ;;  %v2118_v21 = vpop.f32.mrb[13].mxu0 }
0x1417   :  { %1593 = vrot.lane.b32.xlu0 %v1591_v46, %s2415_s21  ;;  %v2387_v46 = vld [vmem:[%s2834_s2 + $0x1] sm:$0x1] }
0x1428   :  { %v1578_v23 = vpop.f32.mrb[12].mxu1 }
0x1429   :  { %v1687_v47 = vrot.slane %v1578_v23, 1  ;;  %v1580_v48 = vpop.f32.mrb[13].mxu1  ;;  %v1583_v26 = vadd.f32 %v1578_v23, %v2523_v52 }
0x142a   :  { %v1710_v49 = vadd.f32 %v1580_v48, %v2512_v37  ;;  %v1699_v57 = vrot.slane %v1580_v48, 1 }
0x142b   :  { %1688 = vrot.lane.b32.xlu1 %v1687_v47, %s2417_s12  ;;  %v1584_v50 = vadd.f32 %v1583_v26, %v1455_v20 }
0x142c   :  { %v1712_v25 = vrot.slane %v1710_v49, 1 }
0x142d   :  { %v1995_v29 = vmul.f32 -1.442695, %v1584_v50 }
0x142e   :  { %1713 = vrot.lane.b32.xlu0 %v1712_v25, %s2416_s11 }
0x142f   :  { %2365 = vpow2.f32 %v1995_v29  ;;  %v29_v29 = vld [vmem:[%s2833_s1 + $0xa0] sm:$0xff] }
0x1439   :  { %v2366_v51 = vpop.eup %2365 }
0x143a   :  { %v1588_v53 = vadd.f32 1.0, %v2366_v51  ;;  %v30_v51 = vld [vmem:[%s2833_s1 + $0xb0] sm:$0xff] }
0x143c   :  { %2367 = vrcp.f32 %v1588_v53  ;;  %v31_v53 = vld [vmem:[%s2833_s1 + $0xc0] sm:$0xff] }
0x1446   :  { %v2368_v54 = vpop.eup %2367 }
0x1447   :  { %v1603_v9 = vsub.f32 1.0, %v2368_v54  ;;  %v1609_v11 = vmul.f32 %v2368_v54, %v2741_v22 }
0x1489   :  { %v1594_v55 = vpop.permute.xlu0 %1593 }
0x148a   :  { %v1596_v56 = vmul.f32 %v2368_v54, %v1594_v55  ;;  %v2251_v54 = vpack.c.bf16 %v30_v51, %v29_v29  ;;  %v32_v55 = vld [vmem:[%s2833_s1 + $0xd0] sm:$0xff] }
0x148c   :  { %1598 = vrot.lane.b32.xlu1 %v1596_v56, %s2415_s21  ;;  %v2254_v56 = vpack.c.bf16 %v32_v55, %v31_v53 }
0x1490   :  { %1700 = vrot.lane.b32.xlu1 %v1699_v57, %s2417_s12 }
0x149d   :  { %v1689_v37 = vpop.permute.xlu1 %1688 }
0x149e   :  { %v1691_v58 = vadd.f32 %v1689_v37, %v2458_v8  ;;  %v1837_v37 = vrot.slane %v2598_v32, 7 }
0x14a0   :  { %v1997_v59 = vmul.f32 -1.442695, %v1691_v58  ;;  %v1714_v62 = vpop.permute.xlu0 %1713  ;;  %v1839_v58 = vrot.slane %v2635_v34, 6 }
0x14a2   :  { %2369 = vpow2.f32 %v1997_v59  ;;  %v1841_v59 = vrot.slane %v2672_v36, 5 }
0x14ac   :  { %v2370_v52 = vpop.eup %2369 }
0x14ad   :  { %v1695_v60 = vadd.f32 1.0, %v2370_v52 }
0x14af   :  { %2371 = vrcp.f32 %v1695_v60  ;;  %v1853_v60 = vsel %vm1852_vm3, %v2564_v33, %v1837_v37 }
0x14b0   :  { %v1855_v32 = vsel %vm1854_vm4, %v1853_v60, %v1839_v58 }
0x14b9   :  { %v2372_v61 = vpop.eup %2371 }
0x14ba   :  { %v1716_v63 = vmul.f32 %v2372_v61, %v1714_v62  ;;  %v1843_v61 = vrot.slane %v2709_v40, 4 }
0x14bc   :  { %1718 = vrot.lane.b32.xlu0 %v1716_v63, %s2415_s21 }
0x14fe   :  { %v1599_v0 = vpop.permute.xlu1 %1598 }
0x14ff   :  { %v1601_v1 = vadd.f32 %v1599_v0, %v1583_v26 }
0x1501   :  { %2373 = vtanh.f32 %v1601_v1 }
0x1502   :  { %v1701_v15 = vpop.permute.xlu1 %1700 }
0x1503   :  { %v1703_v16 = vadd.f32 %v1701_v15, %v2458_v8 }
0x1505   :  { %v1998_v17 = vmul.f32 -1.442695, %v1703_v16 }
0x150b   :  { %v2374_v3 = vpop.eup %2373 }
0x150c   :  { %1605 = vrot.lane.b32.xlu0 %v2374_v3, %s2416_s11  ;;  %v1857_v3 = vsel %vm1856_vm5, %v1855_v32, %v1841_v59 }
0x150d   :  { %v1859_v36 = vsel %vm1858_vm6, %v1857_v3, %v1843_v61 }
0x152e   :  { %v1719_v5 = vpop.permute.xlu0 %1718 }
0x152f   :  { %v1721_v6 = vadd.f32 %v1719_v5, %v2458_v8 }
0x1531   :  { %2375 = vtanh.f32 %v1721_v6 }
0x1532   :  { %2377 = vpow2.f32 %v1998_v17 }
0x153b   :  { %v2376_v7 = vpop.eup %2375 }
0x153c   :  { %1725 = vrot.lane.b32.xlu1 %v2376_v7, %s2416_s11  ;;  %v2378_v18 = vpop.eup %2377  ;;  %v2001_v7 = vld [vmem:[%s2834_s2 + $0x4] ss:$0 sm:$0xff] }
0x153d   :  { %v1707_v19 = vadd.f32 1.0, %v2378_v18 }
0x153f   :  { %2379 = vrcp.f32 %v1707_v19 }
0x1549   :  { %v2380_v27 = vpop.eup %2379 }
0x154a   :  { %v1723_v31 = vsub.f32 1.0, %v2380_v27  ;;  %v1731_v24 = vmul.f32 %v2380_v27, %v1729_v30 }
0x157e   :  { %v1606_v10 = vpop.permute.xlu0 %1605 }
0x157f   :  { %v1608_v12 = vmul.f32 %v1606_v10, %v1603_v9 }
0x1581   :  { %v2776_v14 = vadd.f32 %v1609_v11, %v1608_v12 }
0x1583   :  { %1612 = vrot.lane.b32.xlu0 %v2776_v14, %s2416_s11  ;;  %v1847_v1 = vrot.slane %v2776_v14, 2 }
0x15ae   :  { %v1726_v35 = vpop.permute.xlu1 %1725 }
0x15af   :  { %v1728_v38 = vmul.f32 %v1726_v35, %v1723_v31 }
0x15b1   :  { %v1732_v39 = vadd.f32 %v1731_v24, %v1728_v38 }
0x15b3   :  { %v1734_v28 = vrot.slane %v1732_v39, 7 }
0x15b5   :  { %1735 = vrot.lane.b32.xlu1 %v1734_v28, %s2416_s11 }
0x15f5   :  { %v1613_v41 = vpop.permute.xlu0 %1612 }
0x15f6   :  { %2128 = vmatmul.mubr.msk.f32.vlgmr.msra.gmra.mrb[14].mxu0 %vm143_vm2, %v1613_v41 }
0x15f7   :  { %2138 = vmatprep.mubr.msk.f32.mxu0 %vm2413_vm0, %v2414_v4  ;;  %2252 = vmatpush3.bf16.msra.mxu0 %v2251_v54 }
0x15f8   :  { %2253 = vmatprep.subr.bf16.mxu0 %v2412_v2  ;;  %v1845_v2 = vrot.slane %v2741_v22, 3 }
0x15fa   :  { %v1861_v5 = vsel %vm1860_vm7, %v1859_v36, %v1845_v2 }
0x15fb   :  { %2255 = vmatpush3.bf16.msra.mxu0 %v2254_v56  ;;  %v1863_v40 = vsel %vm1862_vm8, %v1861_v5, %v1847_v1 }
0x1627   :  { %v1736_v8 = vpop.permute.xlu1 %1735 }
0x1628   :  { %1999 = vmatmul.mubr.msk.f32.vlgmr.msra.gmra.mrb[14].mxu1 %vm143_vm2, %v1736_v8 }
0x16c9   :  { %v1682_v43 = vpop.f32.mrb[14].mxu0 }
0x16ca   :  { %v1817_v42 = vadd.f32 %v1682_v43, %v2580_v45  ;;  %v2129_v44 = vpop.f32.mrb[15].mxu0 }
0x16cc   :  { %1819 = vrot.lane.b32.xlu0 %v1817_v42, %s2415_s21 }
0x16fb   :  { %v1805_v13 = vpop.f32.mrb[14].mxu1 }
0x16fc   :  { %v1807_v20 = vpop.f32.mrb[15].mxu1  ;;  %v1809_v21 = vadd.f32 %v2387_v46, %v1805_v13 }
0x16fe   :  { %v1810_v23 = vadd.f32 %v1809_v21, %v1682_v43 }
0x1700   :  { %v2000_v47 = vmul.f32 -1.442695, %v1810_v23 }
0x1702   :  { %2381 = vpow2.f32 %v2000_v47 }
0x170c   :  { %v2382_v4 = vpop.eup %2381 }
0x170d   :  { %v1814_v48 = vadd.f32 1.0, %v2382_v4 }
0x170f   :  { %2383 = vrcp.f32 %v1814_v48 }
0x1719   :  { %v2384_v49 = vpop.eup %2383 }
0x171a   :  { %v1829_v52 = vsub.f32 1.0, %v2384_v49  ;;  %v1835_v63 = vmul.f32 %v2384_v49, %v2776_v14 }
0x173e   :  { %v1820_v25 = vpop.permute.xlu0 %1819 }
0x173f   :  { %v1822_v26 = vmul.f32 %v2384_v49, %v1820_v25 }
0x1741   :  { %1824 = vrot.lane.b32.xlu1 %v1822_v26, %s2415_s21 }
0x17b3   :  { %v1825_v45 = vpop.permute.xlu1 %1824 }
0x17b4   :  { %v1827_v50 = vadd.f32 %v1825_v45, %v1809_v21 }
0x17b6   :  { %2385 = vtanh.f32 %v1827_v50 }
0x17c0   :  { %v2386_v57 = vpop.eup %2385 }
0x17c1   :  { %1831 = vrot.lane.b32.xlu0 %v2386_v57, %s2416_s11 }
0x1833   :  { %v1832_v62 = vpop.permute.xlu0 %1831 }
0x1834   :  { %v1834_v0 = vmul.f32 %v1832_v62, %v1829_v52 }
0x1836   :  { %v1836_v34 = vadd.f32 %v1835_v63, %v1834_v0 }
0x1838   :  { %v1850_v33 = vrot.slane %v1836_v34, 1 }
0x183a   :  { %v1865_v6 = vsel %vm1864_vm9, %v1863_v40, %v1850_v33 }
0x183b   :  { %1871 = vrot.lane.b32.xlu1 %v1865_v6, %s2416_s11 }
0x18ad   :  { %v1872_v22 = vpop.permute.xlu1 %1871 }
0x18ae   :  { %2139 = vmatmul.mubr.msk.f32.vlgmr.msra.gmra.mrb[16].mxu0 %vm143_vm2, %v1872_v22 }
0x1981   :  { %v1941_v9 = vpop.f32.mrb[16].mxu0 }
0x1982   :  { %v1942_v10 = vadd.f32 %v2001_v7, %v1941_v9  ;;  %v2140_v11 = vpop.f32.mrb[17].mxu0 }
0x1984   :  { %1946 = vst.msk [vmem:[#allocation2] sm:$0xff] %vm1945_vm10, %v1942_v10 }
0x1985   :  { %2399 = shalt.err (!%p2396_p4)
}
0x1986   :  { %s2400_s13 = scalar_lea.hbm %s2835_s3, 128 }
0x1987   :  { %p2401_p5 = scmp.ne.s32.totalorder %s2835_s3, %s2400_s13  ;;  %p2404_p6 = scmp.lt.u32.totalorder %s2400_s13, %s2835_s3 }
0x1989   :  { %p2406_p7 = pnand %p2404_p6, %p2401_p5 }
0x198b   :  { %2409 = shalt.err (!%p2406_p7)
}
0x198c   :  { %1956 = dma.vmem_to_hbm [thread:$0]  %s1954_s9, 128, %s2835_s3, [#allocation3]  }
0x198d   :  { %2410 = dma.done.wait [#allocation3], 128  }
0x198e   :  { %2411 = vsyncadd [#allocation3], 4294967168 }
0x198f   :  { %1960 = vsyncpa [#allocation3], 1 }

</bundles_post_ra>
